<compile_context>
chip_gen: v7x
topology: tpu7x:2x2x1
jax: 0.10.0
libtpu: 0.0.40
codegen_flags: <defaults>
</compile_context>

<pallas_src>
import functools

import jax
import jax.numpy as jnp
from jax.experimental import pallas as pl
from jax.experimental.pallas import tpu as pltpu


def _fea_kernel(x_ref, wqT_ref, bq_ref, wk_ref, bk_ref, wvT_ref, bv_ref,
                mask_ref, o_ref, qT_scr, k_scr, vT_scr, *, n_true, n_pad, tq):
    # x_ref:    (1, C, n_pad) f32 — one sample, VMEM-resident across query tiles
    # wqT_ref:  (C, Cr) bf16    bq_ref: (1, Cr) f32
    # wk_ref:   (Cr, C) bf16    bk_ref: (Cr, 1) f32
    # wvT_ref:  (C, C)  bf16    bv_ref: (1, C)  f32
    # mask_ref: (1, n_pad) f32 additive key mask (0 real / -1e30 padded)
    # o_ref:    (1, C, tq)
    # scratch:  qT (n_pad, Cr) bf16, K (Cr, n_pad) bf16, V^T (n_pad, C) bf16
    t = pl.program_id(1)

    # Compute Q^T, K, V^T once per sample; keep resident in bf16 VMEM scratch.
    @pl.when(t == 0)
    def _():
        x_all = x_ref[0]                                        # (C, n_pad) f32
        x_bf = x_all.astype(jnp.bfloat16)                       # (C, n_pad)
        xT_bf = jnp.transpose(x_all).astype(jnp.bfloat16)       # (n_pad, C)

        # Q^T = X^T Wq^T + bq      (both operands natural MXU layout)
        qT = jnp.dot(xT_bf, wqT_ref[...],
                     preferred_element_type=jnp.float32) + bq_ref[...]
        qT_scr[...] = qT.astype(jnp.bfloat16)                   # (n_pad, Cr)

        # K = Wk X + bk
        k = jnp.dot(wk_ref[...], x_bf,
                    preferred_element_type=jnp.float32) + bk_ref[...]
        k_scr[...] = k.astype(jnp.bfloat16)                     # (Cr, n_pad)

        # V^T = X^T Wv^T + bv   (stored transposed so the E @ V^T matmul below
        # needs no XLU transpose of the big probability matrix)
        vT = jnp.dot(xT_bf, wvT_ref[...],
                     preferred_element_type=jnp.float32) + bv_ref[...]
        vT_scr[...] = vT.astype(jnp.bfloat16)                   # (n_pad, C)

    col0 = pl.multiple_of(t * tq, tq)
    x_t = x_ref[0, :, pl.ds(col0, tq)]                          # (C, tq) f32

    q_t = qT_scr[pl.ds(col0, tq), :]                            # (tq, Cr) bf16

    # scores[i, j] = sum_r Q^T[i, r] K[r, j]   (natural layouts, f32 accum)
    scores = jnp.dot(q_t, k_scr[...],
                     preferred_element_type=jnp.float32)        # (tq, n_pad)

    if n_pad != n_true:
        scores = scores + mask_ref[...]          # additive mask on padded keys

    # Row softmax with deferred normalization (f32 elementwise; exp on EUP).
    m = jnp.max(scores, axis=-1, keepdims=True)
    e = jnp.exp(scores - m)                                     # (tq, n_pad)
    denom = jnp.sum(e, axis=-1, keepdims=True)                  # (tq, 1)

    # out^T = E V^T -> (tq, C); both operands natural, no big transpose.
    outT = jnp.dot(e.astype(jnp.bfloat16), vT_scr[...],
                   preferred_element_type=jnp.float32)          # (tq, C)
    outT = outT * pl.reciprocal(denom, approx=True)             # normalize late

    out_t = jnp.transpose(outT)                                 # (C, tq) small
    o_ref[0] = (out_t + x_t).astype(o_ref.dtype)                # residual add


def _vmem_capacity_bytes(default=64 * 1024 * 1024):
    try:
        info = pltpu.get_tpu_info()
        return int(getattr(info, "vmem_capacity_bytes", default))
    except Exception:
        return default


def fea(x, wq, bq, wk, bk, wv, bv):
    """x: (B, C, H, W). wq/wk: (C//8, C), bq/bk: (C//8,), wv: (C, C), bv: (C,).

    1x1 conv weights are passed squeezed to 2-D (out_ch, in_ch).
    """
    B, C, H, W = x.shape
    Cr = wq.shape[0]
    N = H * W
    n_pad = ((N + 127) // 128) * 128           # lane-dense spatial axis

    vmem_cap = _vmem_capacity_bytes()

    # Query-tile width (output lane width): multiple of 128 for unmasked vst.
    # Capped so the live (tq, n_pad) f32 temporaries stay modest on v7x.
    tq = 128
    if n_pad % 256 == 0 and n_pad >= 1024:
        tq = 256
    if (n_pad % 512 == 0 and 2048 <= n_pad <= 4096
            and vmem_cap >= 100 * 1024 * 1024):
        tq = 512
    n_tiles = n_pad // tq

    xf = x.reshape(B, C, N)
    if n_pad != N:
        xf = jnp.pad(xf, ((0, 0), (0, 0), (0, n_pad - N)))

    # bf16 MXU operands prepared once in the wrapper (half-size weight DMAs).
    wqT = jnp.transpose(wq).astype(jnp.bfloat16)     # (C, Cr)
    wk_b = wk.astype(jnp.bfloat16)                   # (Cr, C)
    wvT = jnp.transpose(wv).astype(jnp.bfloat16)     # (C, C)
    bq_r = bq.reshape(1, Cr).astype(jnp.float32)
    bk_c = bk.reshape(Cr, 1).astype(jnp.float32)
    bv_r = bv.reshape(1, C).astype(jnp.float32)

    # Additive key mask row: 0 on real columns, -1e30 on padded columns.
    col_ids = jnp.arange(n_pad, dtype=jnp.int32)
    mask = jnp.where(col_ids < N, 0.0, -1e30).astype(jnp.float32).reshape(1, n_pad)

    kernel = functools.partial(_fea_kernel, n_true=N, n_pad=n_pad, tq=tq)

    # Advisory cost hint for XLA's scheduler.
    flops = (2 * B * n_pad * C * (2 * Cr + C)
             + 2 * B * n_pad * n_pad * (Cr + C))
    bytes_accessed = (2 * B * C * n_pad * 4
                      + 2 * (2 * Cr * C + C * C) + 4 * (2 * Cr + C) + 4 * n_pad)
    cost = pl.CostEstimate(flops=flops,
                           transcendentals=B * n_pad * n_pad + B * n_pad,
                           bytes_accessed=bytes_accessed)

    # VMEM budget: double-buffered x slab + output tiles, bf16 Q^T/K/V^T
    # scratch, live (tq, n_pad) f32 softmax temporaries, t==0 locals, weights.
    vmem_need = (2 * C * n_pad * 4                      # x slab (double-buffer)
                 + 2 * C * tq * 4                       # output tile
                 + (2 * Cr * n_pad + C * n_pad) * 2     # bf16 scratch
                 + 3 * tq * n_pad * 4                   # scores / e live temps
                 + 3 * C * n_pad * 2 + C * n_pad * 4    # t==0 projection temps
                 + 4 * (2 * Cr * C + C * C)             # bf16 weights (x2 buf)
                 + 4 * (2 * Cr + C + n_pad))            # biases + mask
    vmem_limit = int(min(int(0.75 * vmem_cap),
                         max(32 * 1024 * 1024, int(1.3 * vmem_need))))

    out_flat = pl.pallas_call(
        kernel,
        out_shape=jax.ShapeDtypeStruct((B, C, n_pad), x.dtype),
        grid_spec=pltpu.PrefetchScalarGridSpec(
            num_scalar_prefetch=0,
            grid=(B, n_tiles),
            in_specs=[
                pl.BlockSpec((1, C, n_pad), lambda b, t: (b, 0, 0)),  # x slab
                pl.BlockSpec((C, Cr), lambda b, t: (0, 0)),           # wq^T
                pl.BlockSpec((1, Cr), lambda b, t: (0, 0)),           # bq
                pl.BlockSpec((Cr, C), lambda b, t: (0, 0)),           # wk
                pl.BlockSpec((Cr, 1), lambda b, t: (0, 0)),           # bk
                pl.BlockSpec((C, C), lambda b, t: (0, 0)),            # wv^T
                pl.BlockSpec((1, C), lambda b, t: (0, 0)),            # bv
                pl.BlockSpec((1, n_pad), lambda b, t: (0, 0)),        # key mask
            ],
            out_specs=pl.BlockSpec((1, C, tq), lambda b, t: (b, 0, t)),
            scratch_shapes=[
                pltpu.VMEM((n_pad, Cr), jnp.bfloat16),   # Q^T
                pltpu.VMEM((Cr, n_pad), jnp.bfloat16),   # K
                pltpu.VMEM((n_pad, C), jnp.bfloat16),    # V^T
            ],
        ),
        compiler_params=pltpu.CompilerParams(
            dimension_semantics=("parallel", "arbitrary"),
            vmem_limit_bytes=vmem_limit),
        cost_estimate=cost,
    )(xf, wqT, bq_r, wk_b, bk_c, wvT, bv_r, mask)

    if n_pad != N:
        out_flat = out_flat[:, :, :N]
    return out_flat.reshape(B, C, H, W)


def fea_ref(x, wq, bq, wk, bk, wv, bv):
    """Pure-JAX (f32) reference matching the PyTorch FEA forward."""
    B, C, H, W = x.shape
    N = H * W
    xf = x.reshape(B, C, N)
    q = jnp.einsum('rc,bcn->brn', wq, xf) + bq[None, :, None]      # (B, Cr, N)
    k = jnp.einsum('rc,bcn->brn', wk, xf) + bk[None, :, None]      # (B, Cr, N)
    v = jnp.einsum('oc,bcn->bon', wv, xf) + bv[None, :, None]      # (B, C, N)
    attn = jax.nn.softmax(jnp.einsum('brn,brm->bnm', q, k), axis=-1)
    out = jnp.einsum('bcm,bnm->bcn', v, attn)                      # (B, C, N)
    return out.reshape(B, C, H, W) + x


if __name__ == "__main__":
    def run_case(B, C, H, W):
        Cr = C // 8
        key = jax.random.PRNGKey(0)
        ks = jax.random.split(key, 7)
        x = jax.random.normal(ks[0], (B, C, H, W), dtype=jnp.float32)
        wq = 0.1 * jax.random.normal(ks[1], (Cr, C), dtype=jnp.float32)
        bq = 0.1 * jax.random.normal(ks[2], (Cr,), dtype=jnp.float32)
        wk = 0.1 * jax.random.normal(ks[3], (Cr, C), dtype=jnp.float32)
        bk = 0.1 * jax.random.normal(ks[4], (Cr,), dtype=jnp.float32)
        wv = 0.1 * jax.random.normal(ks[5], (C, C), dtype=jnp.float32)
        bv = 0.1 * jax.random.normal(ks[6], (C,), dtype=jnp.float32)

        out = jax.block_until_ready(fea(x, wq, bq, wk, bk, wv, bv))
        ref = jax.block_until_ready(fea_ref(x, wq, bq, wk, bk, wv, bv))
        assert out.shape == x.shape and out.dtype == x.dtype
        err = float(jnp.max(jnp.abs(out - ref)))
        # bf16 MXU operands (f32 accumulation) + approx reciprocal: tolerance
        # loosened vs. the pure-f32 reference.
        assert jnp.allclose(out, ref, atol=2e-2, rtol=2e-2), \
            f"mismatch, max err {err}"

    run_case(2, 32, 16, 16)   # N = 256: lane-aligned, 2 query tiles per sample
    run_case(2, 32, 12, 12)   # N = 144: exercises lane padding + key masking
    print("KERNEL_OK")
</pallas_src>

<mosaic_0001>
module attributes {stable_mosaic.version = 11 : i64} {
  func.func @_fea_kernel(%arg0: i32, %arg1: i32, %arg2: memref<1x32x256xf32, #tpu.memory_space<vmem>>, %arg3: memref<32x4xbf16, #tpu.memory_space<vmem>>, %arg4: memref<1x4xf32, #tpu.memory_space<vmem>>, %arg5: memref<4x32xbf16, #tpu.memory_space<vmem>>, %arg6: memref<4x1xf32, #tpu.memory_space<vmem>>, %arg7: memref<32x32xbf16, #tpu.memory_space<vmem>>, %arg8: memref<1x32xf32, #tpu.memory_space<vmem>>, %arg9: memref<1x256xf32, #tpu.memory_space<vmem>>, %arg10: memref<1x32x128xf32, #tpu.memory_space<vmem>>, %arg11: memref<256x4xbf16, #tpu.memory_space<vmem>>, %arg12: memref<4x256xbf16, #tpu.memory_space<vmem>>, %arg13: memref<256x32xbf16, #tpu.memory_space<vmem>>) attributes {dimension_semantics = [#tpu.dimension_semantics<parallel>, #tpu.dimension_semantics<arbitrary>], iteration_bounds = array<i64: 2, 2>, scalar_prefetch = 0 : i64, scratch_operands = 3 : i64, tpu.core_type = #tpu.core_type<tc>, window_params = [{transform_indices = @transform_0, window_bounds = array<i64: 1, 32, 256>}, {pipeline_mode = #tpu.pipeline_mode<synchronous>, transform_indices = @transform_1, window_bounds = array<i64: 32, 4>}, {pipeline_mode = #tpu.pipeline_mode<synchronous>, transform_indices = @transform_2, window_bounds = array<i64: 1, 4>}, {pipeline_mode = #tpu.pipeline_mode<synchronous>, transform_indices = @transform_3, window_bounds = array<i64: 4, 32>}, {pipeline_mode = #tpu.pipeline_mode<synchronous>, transform_indices = @transform_4, window_bounds = array<i64: 4, 1>}, {pipeline_mode = #tpu.pipeline_mode<synchronous>, transform_indices = @transform_5, window_bounds = array<i64: 32, 32>}, {pipeline_mode = #tpu.pipeline_mode<synchronous>, transform_indices = @transform_6, window_bounds = array<i64: 1, 32>}, {pipeline_mode = #tpu.pipeline_mode<synchronous>, transform_indices = @transform_7, window_bounds = array<i64: 1, 256>}, {transform_indices = @transform_8, window_bounds = array<i64: 1, 32, 128>}]} {
    %c0_i32 = arith.constant 0 : i32
    %0 = arith.cmpi eq, %arg1, %c0_i32 : i32
    %1 = arith.extui %0 : i1 to i32
    %c0_i32_0 = arith.constant 0 : i32
    %2 = arith.cmpi ne, %1, %c0_i32_0 : i32
    scf.if %2 {
      %c0_13 = arith.constant 0 : index
      %c0_14 = arith.constant 0 : index
      %c0_15 = arith.constant 0 : index
      %30 = vector.load %arg2[%c0_13, %c0_14, %c0_15] : memref<1x32x256xf32, #tpu.memory_space<vmem>>, vector<1x32x256xf32>
      %31 = vector.shape_cast %30 : vector<1x32x256xf32> to vector<32x256xf32>
      %32 = arith.truncf %31 : vector<32x256xf32> to vector<32x256xbf16>
      %33 = tpu.transpose %31, [1, 0] : vector<32x256xf32> -> vector<256x32xf32>
      %34 = arith.truncf %33 : vector<256x32xf32> to vector<256x32xbf16>
      %c0_16 = arith.constant 0 : index
      %c0_17 = arith.constant 0 : index
      %35 = vector.load %arg3[%c0_16, %c0_17] : memref<32x4xbf16, #tpu.memory_space<vmem>>, vector<32x4xbf16>
      %cst_18 = arith.constant dense<0.000000e+00> : vector<256x4xf32>
      %36 = tpu.matmul %34, %35, %cst_18 {dimension_numbers = #tpu.dot_dimension_numbers<[1], [0], [0], [1], [0, 0, 1, 1], [], []>} : vector<256x32xbf16>, vector<32x4xbf16>, vector<256x4xf32> -> vector<256x4xf32>
      %c0_19 = arith.constant 0 : index
      %c0_20 = arith.constant 0 : index
      %37 = vector.load %arg4[%c0_19, %c0_20] : memref<1x4xf32, #tpu.memory_space<vmem>>, vector<1x4xf32>
      %38 = vector.broadcast %37 : vector<1x4xf32> to vector<256x4xf32>
      %39 = arith.addf %36, %38 : vector<256x4xf32>
      %40 = arith.truncf %39 : vector<256x4xf32> to vector<256x4xbf16>
      %c0_21 = arith.constant 0 : index
      %c0_22 = arith.constant 0 : index
      %41 = vector.load %arg11[%c0_21, %c0_22] : memref<256x4xbf16, #tpu.memory_space<vmem>>, vector<256x4xbf16>
      tpu.vector_store %arg11[%c0_21, %c0_22], %40 {strides = array<i32>} : memref<256x4xbf16, #tpu.memory_space<vmem>>, vector<256x4xbf16>,
      %c0_23 = arith.constant 0 : index
      %c0_24 = arith.constant 0 : index
      %42 = vector.load %arg5[%c0_23, %c0_24] : memref<4x32xbf16, #tpu.memory_space<vmem>>, vector<4x32xbf16>
      %cst_25 = arith.constant dense<0.000000e+00> : vector<4x256xf32>
      %43 = tpu.matmul %42, %32, %cst_25 {dimension_numbers = #tpu.dot_dimension_numbers<[1], [0], [0], [1], [0, 0, 1, 1], [], []>} : vector<4x32xbf16>, vector<32x256xbf16>, vector<4x256xf32> -> vector<4x256xf32>
      %c0_26 = arith.constant 0 : index
      %c0_27 = arith.constant 0 : index
      %44 = vector.load %arg6[%c0_26, %c0_27] : memref<4x1xf32, #tpu.memory_space<vmem>>, vector<4x1xf32>
      %45 = vector.broadcast %44 : vector<4x1xf32> to vector<4x256xf32>
      %46 = arith.addf %43, %45 : vector<4x256xf32>
      %47 = arith.truncf %46 : vector<4x256xf32> to vector<4x256xbf16>
      %c0_28 = arith.constant 0 : index
      %c0_29 = arith.constant 0 : index
      %48 = vector.load %arg12[%c0_28, %c0_29] : memref<4x256xbf16, #tpu.memory_space<vmem>>, vector<4x256xbf16>
      tpu.vector_store %arg12[%c0_28, %c0_29], %47 {strides = array<i32>} : memref<4x256xbf16, #tpu.memory_space<vmem>>, vector<4x256xbf16>,
      %c0_30 = arith.constant 0 : index
      %c0_31 = arith.constant 0 : index
      %49 = vector.load %arg7[%c0_30, %c0_31] : memref<32x32xbf16, #tpu.memory_space<vmem>>, vector<32x32xbf16>
      %cst_32 = arith.constant dense<0.000000e+00> : vector<256x32xf32>
      %50 = tpu.matmul %34, %49, %cst_32 {dimension_numbers = #tpu.dot_dimension_numbers<[1], [0], [0], [1], [0, 0, 1, 1], [], []>} : vector<256x32xbf16>, vector<32x32xbf16>, vector<256x32xf32> -> vector<256x32xf32>
      %c0_33 = arith.constant 0 : index
      %c0_34 = arith.constant 0 : index
      %51 = vector.load %arg8[%c0_33, %c0_34] : memref<1x32xf32, #tpu.memory_space<vmem>>, vector<1x32xf32>
      %52 = vector.broadcast %51 : vector<1x32xf32> to vector<256x32xf32>
      %53 = arith.addf %50, %52 : vector<256x32xf32>
      %54 = arith.truncf %53 : vector<256x32xf32> to vector<256x32xbf16>
      %c0_35 = arith.constant 0 : index
      %c0_36 = arith.constant 0 : index
      %55 = vector.load %arg13[%c0_35, %c0_36] : memref<256x32xbf16, #tpu.memory_space<vmem>>, vector<256x32xbf16>
      tpu.vector_store %arg13[%c0_35, %c0_36], %54 {strides = array<i32>} : memref<256x32xbf16, #tpu.memory_space<vmem>>, vector<256x32xbf16>,
    } else {
    }
    %c128_i32 = arith.constant 128 : i32
    %3 = arith.muli %arg1, %c128_i32 : i32
    %4 = tpu.assume_multiple %3, 128 : i32
    %c0 = arith.constant 0 : index
    %c0_1 = arith.constant 0 : index
    %5 = arith.index_cast %4 : i32 to index
    %6 = vector.load %arg2[%c0, %c0_1, %5] : memref<1x32x256xf32, #tpu.memory_space<vmem>>, vector<1x32x128xf32>
    %7 = vector.shape_cast %6 : vector<1x32x128xf32> to vector<32x128xf32>
    %8 = arith.index_cast %4 : i32 to index
    %c0_2 = arith.constant 0 : index
    %9 = vector.load %arg11[%8, %c0_2] : memref<256x4xbf16, #tpu.memory_space<vmem>>, vector<128x4xbf16>
    %c0_3 = arith.constant 0 : index
    %c0_4 = arith.constant 0 : index
    %10 = vector.load %arg12[%c0_3, %c0_4] : memref<4x256xbf16, #tpu.memory_space<vmem>>, vector<4x256xbf16>
    %cst = arith.constant dense<0.000000e+00> : vector<128x256xf32>
    %11 = tpu.matmul %9, %10, %cst {dimension_numbers = #tpu.dot_dimension_numbers<[1], [0], [0], [1], [0, 0, 1, 1], [], []>} : vector<128x4xbf16>, vector<4x256xbf16>, vector<128x256xf32> -> vector<128x256xf32>
    %cst_5 = arith.constant dense<0xFF800000> : vector<128xf32>
    %12 = vector.multi_reduction <maximumf>, %11, %cst_5 [1] : vector<128x256xf32> to vector<128xf32>
    %13 = vector.shape_cast %12 : vector<128xf32> to vector<128x1xf32>
    %14 = vector.broadcast %13 : vector<128x1xf32> to vector<128x256xf32>
    %15 = arith.subf %11, %14 : vector<128x256xf32>
    %16 = math.exp %15 : vector<128x256xf32>
    %cst_6 = arith.constant dense<0.000000e+00> : vector<128xf32>
    %17 = vector.multi_reduction <add>, %16, %cst_6 [1] : vector<128x256xf32> to vector<128xf32>
    %18 = vector.shape_cast %17 : vector<128xf32> to vector<128x1xf32>
    %19 = arith.truncf %16 : vector<128x256xf32> to vector<128x256xbf16>
    %c0_7 = arith.constant 0 : index
    %c0_8 = arith.constant 0 : index
    %20 = vector.load %arg13[%c0_7, %c0_8] : memref<256x32xbf16, #tpu.memory_space<vmem>>, vector<256x32xbf16>
    %cst_9 = arith.constant dense<0.000000e+00> : vector<128x32xf32>
    %21 = tpu.matmul %19, %20, %cst_9 {dimension_numbers = #tpu.dot_dimension_numbers<[1], [0], [0], [1], [0, 0, 1, 1], [], []>} : vector<128x256xbf16>, vector<256x32xbf16>, vector<128x32xf32> -> vector<128x32xf32>
    %22 = tpu.reciprocal %18 {approx = true} : vector<128x1xf32> -> vector<128x1xf32>
    %23 = vector.broadcast %22 : vector<128x1xf32> to vector<128x32xf32>
    %24 = arith.mulf %21, %23 : vector<128x32xf32>
    %25 = tpu.transpose %24, [1, 0] : vector<128x32xf32> -> vector<32x128xf32>
    %26 = arith.addf %25, %7 : vector<32x128xf32>
    %c0_10 = arith.constant 0 : index
    %c0_11 = arith.constant 0 : index
    %c0_12 = arith.constant 0 : index
    %27 = vector.load %arg10[%c0_10, %c0_11, %c0_12] : memref<1x32x128xf32, #tpu.memory_space<vmem>>, vector<1x32x128xf32>
    %28 = vector.shape_cast %27 : vector<1x32x128xf32> to vector<32x128xf32>
    %29 = vector.shape_cast %26 : vector<32x128xf32> to vector<1x32x128xf32>
    tpu.vector_store %arg10[%c0_10, %c0_11, %c0_12], %29 {strides = array<i32>} : memref<1x32x128xf32, #tpu.memory_space<vmem>>, vector<1x32x128xf32>,
    return
  }
  func.func @transform_0(%arg0: i32, %arg1: i32) -> (i32, i32, i32) {
    %c0_i32 = arith.constant 0 : i32
    %c0_i32_0 = arith.constant 0 : i32
    %c0_i32_1 = arith.constant 0 : i32
    return %arg0, %c0_i32, %c0_i32_0 : i32, i32, i32
  }
  func.func @transform_1(%arg0: i32, %arg1: i32) -> (i32, i32) {
    %c0_i32 = arith.constant 0 : i32
    %c0_i32_0 = arith.constant 0 : i32
    %c0_i32_1 = arith.constant 0 : i32
    return %c0_i32, %c0_i32_0 : i32, i32
  }
  func.func @transform_2(%arg0: i32, %arg1: i32) -> (i32, i32) {
    %c0_i32 = arith.constant 0 : i32
    %c0_i32_0 = arith.constant 0 : i32
    %c0_i32_1 = arith.constant 0 : i32
    return %c0_i32, %c0_i32_0 : i32, i32
  }
  func.func @transform_3(%arg0: i32, %arg1: i32) -> (i32, i32) {
    %c0_i32 = arith.constant 0 : i32
    %c0_i32_0 = arith.constant 0 : i32
    %c0_i32_1 = arith.constant 0 : i32
    return %c0_i32, %c0_i32_0 : i32, i32
  }
  func.func @transform_4(%arg0: i32, %arg1: i32) -> (i32, i32) {
    %c0_i32 = arith.constant 0 : i32
    %c0_i32_0 = arith.constant 0 : i32
    %c0_i32_1 = arith.constant 0 : i32
    return %c0_i32, %c0_i32_0 : i32, i32
  }
  func.func @transform_5(%arg0: i32, %arg1: i32) -> (i32, i32) {
    %c0_i32 = arith.constant 0 : i32
    %c0_i32_0 = arith.constant 0 : i32
    %c0_i32_1 = arith.constant 0 : i32
    return %c0_i32, %c0_i32_0 : i32, i32
  }
  func.func @transform_6(%arg0: i32, %arg1: i32) -> (i32, i32) {
    %c0_i32 = arith.constant 0 : i32
    %c0_i32_0 = arith.constant 0 : i32
    %c0_i32_1 = arith.constant 0 : i32
    return %c0_i32, %c0_i32_0 : i32, i32
  }
  func.func @transform_7(%arg0: i32, %arg1: i32) -> (i32, i32) {
    %c0_i32 = arith.constant 0 : i32
    %c0_i32_0 = arith.constant 0 : i32
    %c0_i32_1 = arith.constant 0 : i32
    return %c0_i32, %c0_i32_0 : i32, i32
  }
  func.func @transform_8(%arg0: i32, %arg1: i32) -> (i32, i32, i32) {
    %c0_i32 = arith.constant 0 : i32
    %c0_i32_0 = arith.constant 0 : i32
    return %arg0, %c0_i32, %arg1 : i32, i32, i32
  }
}

</mosaic_0001>

<bundles_post_ra>
// kernel: tpu_custom_call.1
= control target key start
LH: loop header
LB: loop body
LE: loop exit
PB: predicated region body
PF: predicated region fallthrough
CT: control target
= control target key end

     0   :  { %s2895_s0 = inlined_call_operand.hbm [shape: f32[2,32,256], index: 0, kind: input, shape index: {}]   ;;  %s2896_s1 = inlined_call_operand.vmem [shape: bf16[32,4], index: 1, kind: input, shape index: {}]   ;;  %s2897_s2 = inlined_call_operand.vmem [shape: f32[1,4], index: 2, kind: input, shape index: {}]   ;;  %s2898_s3 = inlined_call_operand.vmem [shape: bf16[4,32], index: 3, kind: input, shape index: {}]   ;;  %s2899_s4 = inlined_call_operand.vmem [shape: f32[4,1], index: 4, kind: input, shape index: {}]   ;;  %s2900_s5 = inlined_call_operand.vmem [shape: bf16[32,32], index: 5, kind: input, shape index: {}]   ;;  %s2901_s6 = inlined_call_operand.vmem [shape: f32[1,32], index: 6, kind: input, shape index: {}]   ;;  %s2902_s7 = inlined_call_operand.vmem [shape: f32[1,256], index: 7, kind: input, shape index: {}]   ;;  %s2903_s8 = inlined_call_operand.hbm [shape: f32[2,32,256], index: 8, kind: output, shape index: {}]  }
   0x1   :  { %2910 = sst [smem:[#allocation15_spill]] %s2903_s8 }
   0x2   :  { %13 = vsyncpa [#allocation6], 0 }
   0x3   :  { %15 = vsyncpa [#allocation6 + $0x1], 0 }
   0x4   :  { %16 = vsyncpa [#allocation7], 0 }
   0x5   :  { %18 = vsyncpa [#allocation7 + $0x1], 0  ;;  %s2334_s27 = smov 0   ;;  %s2336_s28 = smov 0  }
   0x6   :  { %s2338_s29 = smov 0   ;;  %s2340_s30 = smov 0  }
   0x7   :  { %s2342_s9 = smov 0   ;;  %s2344_s10 = smov 0  }
   0x8   :  { %s2346_s7 = smov 0   ;;  %s2348_s11 = smov 0  }
   0x9   :  { %s2350_s12 = smov 0   ;;  %s2352_s13 = smov 0  }
   0xa   :  { %s2354_s14 = smov 0  }
   0xb LB: > { %2911 = sst [smem:[#allocation11_spill]] %s2270_s12  ;;  %s1656_s15 = sadd.s32 4294967295, %s2278_s14   ;;  %s2278_s14 = sphi %s2354_s14, %s24_s14   ;;  %s2274_s13 = sphi %s2352_s13, %s2928_s13   ;;  %s2270_s12 = sphi %s2350_s12, %s2927_s12   ;;  %s2266_s11 = sphi %s2348_s11, %s2926_s11   ;;  %s2262_s7 = sphi %s2346_s7, %s2925_s7   ;;  %s2258_s10 = sphi %s2344_s10, %s2934_s10   ;;  %s2254_s9 = sphi %s2342_s9, %s2933_s9   ;;  %s2250_s30 = sphi %s2340_s30, %s2932_s30   ;;  %s2246_s29 = sphi %s2338_s29, %s2931_s29   ;;  %s2242_s28 = sphi %s2336_s28, %s2930_s28   ;;  %s2238_s27 = sphi %s2334_s27, %s2929_s27  }
   0xc   : > { %2912 = sst [smem:[#allocation12_spill]] %s2274_s13  ;;  %s1657_s16 = sadd.s32 4294967294, %s2278_s14  }
   0xd   : > { %s33_s17 = sadd.s32 1, %s2270_s12  ;;  %s36_s18 = sadd.s32 1, %s2274_s13 }
   0xe   : > { %p34_p0 = scmp.ge.s32.totalorder %s33_s17, 2  ;;  %s43_s19 = sadd.s32 1, %s2258_s10 }
   0xf   : > { %p50_p1 = scmp.ne.s32.totalorder %s2258_s10, %s2254_s9  ;;  %p51_p2 = scmp.eq.s32.totalorder %s2278_s14, 0 }
  0x10   : > { %s2936_s17 = smov (%p34_p0, %s33_s17), 0  ;;  %s2938_s18 = smov (!%p34_p0, %s36_s18), %s2274_s13 }
  0x11   : > { %2913 = sst [smem:[#allocation13_spill]] %s2936_s17  ;;  %p2398_p3 = por %p51_p2, %p50_p1 }
  0x12   : > { %p56_p4 = scmp.ne.s32.totalorder %s2254_s9, %s2250_s30  ;;  %p38_p5 = scmp.ge.s32.totalorder %s2938_s18, 2 }
  0x13   : > { %p57_p6 = scmp.eq.s32.totalorder %s1656_s15, 0  ;;  %s214_s21 = ssub.s32 %s2270_s12, %s2936_s17 }
  0x14   : > { %s218_s22 = sadd.s32 1, %s2246_s29  ;;  %s2940_s18 = smov (%p38_p5, %s2938_s18), 0 }
  0x15   : > { %2915 = sst [smem:[#allocation14_spill]] %s2940_s18  ;;  %p2408_p7 = por %p57_p6, %p56_p4 }
  0x16   : > { %p228_p8 = scmp.ne.s32.totalorder %s2246_s29, %s2242_s28  ;;  %s40_s24 = ssub.s32 %s2274_s13, %s2940_s18 }
  0x17   : > { %p229_p9 = scmp.eq.s32.totalorder %s1656_s15, 3  ;;  %p41_p10 = scmp.eq.s32.totalorder %s40_s24, 0 }
  0x18   : > { %s215_s25 = sor.u32 %s214_s21, %s40_s24  ;;  %p234_p13 = scmp.ne.s32.totalorder %s2242_s28, %s2238_s27 }
  0x19   : > { %p216_p11 = scmp.eq.s32.totalorder %s215_s25, 0  ;;  %p2416_p12 = por %p229_p9, %p228_p8 }
  0x1a   : > { %s2421_s30 = scalar_select %p41_p10, %s2258_s10, %s43_s19  }
  0x1b   : > { %s2917_s26 = scalar_select %p2416_p12, 1, 0 }
  0x1c   : > { %s2424_s17 = scalar_select %p216_p11, %s2246_s29, %s218_s22  }
  0x1d   : > { %p235_p0 = scmp.eq.s32.totalorder %s1657_s16, 3  ;;  %p1927_p1 = scmp.lt.s32.totalorder %s2278_s14, 4 }
  0x1e   : > { %s276_s15 = sand.u32 1, %s2258_s10   ;;  %s1726_s24 = sshll.u32 %s2274_s13, 10 }
  0x1f   : > { %p2429_p2 = por %p235_p0, %p234_p13  ;;  %s1660_s21 = sshll.u32 %s276_s15, 6 }
  0x20   : > { %s2438_s8 = scalar_lea.hbm %s2895_s0, %s1726_s24  ;;  %s280_s19 = scalar_lea.vmem [#allocation5], %s1660_s21 }
  0x21   : > { %s2918_s12 = scalar_select %p2429_p2, 1, 0 }
  0x22   : > { %s287_s22 = sshll.u32 %s280_s19, 4  ;;  %p2444_p4 = pnand %p1927_p1, %p2398_p3  ;;  %s2440_s22 = int_to_ptr.vmem [resolvable:$true] %s287_s22 }
  0x23   : > { %s2449_s13 = scalar_lea.sflag [#allocation6], %s276_s15  ;;  %s2126_s18 = scalar_lea.hbm %s2438_s8, 1024 }
  0x24   : > { %p2127_p6 = scmp.ne.s32.totalorder %s2438_s8, %s2126_s18  ;;  %p2128_p8 = pneg %p2444_p4 }
  0x25   : > { %s2131_s20 = scalar_lea.hbm %s2895_s0, 2048  ;;  %p2132_p3 = scmp.lt.u32.totalorder %s2438_s8, %s2895_s0 }
  0x26   : > { %p2129_p9 = pnand %p2128_p8, %p2127_p6  ;;  %p2133_p11 = scmp.lt.u32.totalorder %s2131_s20, %s2126_s18 }
  0x27   : > { %p2135_p0 = scmp.lt.u32.totalorder %s2126_s18, %s2438_s8 }
  0x28   : > { %p2130_p10 = pneg %p2129_p9  ;;  %p2134_p13 = por %p2133_p11, %p2132_p3 }
  0x2a   : > { %p2136_p1 = por %p2135_p0, %p2134_p13 }
  0x2c   : > { %p2137_p5 = pnand %p2136_p1, %p2130_p10 }
  0x2e   : > { %2140 = shalt.err (!%p2137_p5)
}
  0x2f   : > { %s2141_s15 = scalar_lea.vmem %s2440_s22, 1024  ;;  %s2280_s21 = smov [#allocation5]  }
  0x30   : > { %p2142_p6 = scmp.ne.s32.totalorder %s2440_s22, %s2141_s15  ;;  %s2146_s24 = sshll.u32 %s2280_s21, 4  ;;  %s2147_s24 = int_to_ptr.vmem [resolvable:$false] %s2146_s24 }
  0x31   : > { %s2148_s25 = scalar_lea.vmem %s2147_s24, 2048  ;;  %p2149_p12 = scmp.lt.s32.totalorder %s2440_s22, %s2147_s24 }
  0x32   : > { %p2144_p9 = pnand %p2142_p6, %p2128_p8  ;;  %p2150_p3 = scmp.lt.s32.totalorder %s2148_s25, %s2141_s15 }
  0x34   : > { %p2145_p2 = pneg %p2144_p9  ;;  %p2151_p11 = por %p2150_p3, %p2149_p12 }
  0x36   : > { %p2152_p13 = pnand %p2151_p11, %p2145_p2 }
  0x38   : > { %2155 = shalt.err (!%p2152_p13)
}
  0x39   : > { %s2281_s18 = smov 256   ;;  %s2282_s20 = smov 16  }
  0x3a   : > { %1922 = dma.hbm_to_vmem [thread:$0]  (!%p2444_p4), %s2438_s8, 1024, %s2440_s22, %s2449_s13, %s2281_s18, %s2281_s18, %s2282_s20  }
  0x3b   : > { %p295_p5 = scmp.lt.s32.totalorder %s2278_s14, 5  ;;  %p2920_p8 = scmp.ge.s32.totalorder %s2278_s14, 1 }
  0x3d   : > { %p296_p10 = pnand %p2920_p8, %p295_p5 }
  0x3e   : > { %s301_s19 = sand.u32 (!%p296_p10), 1, %s2254_s9  }
  0x3f   : > { %299 = sbr.rel (%p296_p10) target bundleno = 1306 (0x51a), region = 52  ;;  %s1664_s15 = sshll.u32 (!%p296_p10), %s301_s19, 6 }
  0x40   : > { %s302_s21 = scalar_lea.sflag (!%p296_p10), [#allocation6], %s301_s19  ;;  %s2481_s24 = scalar_lea.vmem (!%p296_p10), [#allocation5], %s1664_s15 }
  0x46   : > { %2229 = dma.done.wait (%p2408_p7), %s302_s21, 1024  }
  0x47   : > { %2231 = vsyncadd (%p2408_p7), %s302_s21, 4294966272  ;;  %s335_s16 = sand.u32 1, %s2242_s28   ;;  %p1666_p12 = scmp.ne.s32.totalorder %s2262_s7, 0 }
  0x48   : > { %s1665_s8 = sshll.u32 %s335_s16, 5  ;;  %v343_v0 = vld [vmem:[%s2481_s24] sm:$0xff] (!%p1666_p12)  ;;  %v345_v1 = vld [vmem:[%s2481_s24 + $0x10] sm:$0xff] (!%p1666_p12)  ;;  %v344_v2 = vld [vmem:[%s2481_s24 + $0x8] sm:$0xff] (!%p1666_p12)  ;;  %v2283_v14 = vmov (!%p1666_p12), 0   ;;  %vm458_vm0 = vcmask (!%p1666_p12), 261120  }
  0x49   : > { %s2490_s13 = scalar_lea.vmem [#allocation8], %s1665_s8  ;;  %342 = sbr.rel (%p1666_p12) target bundleno = 517 (0x205), region = 60  ;;  %355 = vxpose.xlu0.b32.start [1/4] (short) (!%p1666_p12), %v343_v0, 128  ;;  %v346_v3 = vld [vmem:[%s2481_s24 + $0x18] sm:$0xff] (!%p1666_p12)  ;;  %v351_v4 = vpack.c.bf16 (!%p1666_p12), %v345_v1, %v343_v0  ;;  %v347_v5 = vld [vmem:[%s2481_s24 + $0x20] sm:$0xff] (!%p1666_p12)  ;;  %v349_v6 = vld [vmem:[%s2481_s24 + $0x30] sm:$0xff] (!%p1666_p12)  ;;  %387 = vxpose.xlu1.b32.start [1/4] (short) (!%p1666_p12), %v344_v2, 128  ;;  %vm684_vm1 = vcmask (!%p1666_p12), 31744  }
  0x4a   : > { %v348_v7 = vld [vmem:[%s2481_s24 + $0x28] sm:$0xff] (!%p1666_p12)  ;;  %v350_v8 = vld [vmem:[%s2481_s24 + $0x38] sm:$0xff] (!%p1666_p12)  ;;  %v352_v9 = vpack.c.bf16 (!%p1666_p12), %v346_v3, %v344_v2  ;;  %v353_v11 = vpack.c.bf16 (!%p1666_p12), %v349_v6, %v347_v5  ;;  %743 = vmatprep.mubr.bf16.mxu1 (!%p1666_p12), %v2283_v14 }
  0x4b   : > { %v354_v10 = vpack.c.bf16 (!%p1666_p12), %v350_v8, %v348_v7  ;;  %v2026_v12 = vld [vmem:[%s2896_s1] sm:$0xff] (!%p1666_p12)   ;;  %v2028_v16 = vld [vmem:[%s2896_s1 + $0x8] sm:$0xff] (!%p1666_p12)  }
  0x4c   : > { %711 = vmatprep.subr.bf16.mxu1 (!%p1666_p12), %v352_v9  ;;  %v2027_v13 = vld [vmem:[%s2900_s5] sm:$0xff] (!%p1666_p12)   ;;  %1827 = vmatprep.subr.bf16.mxu0 (!%p1666_p12), %v2026_v12  ;;  %v2029_v17 = vld [vmem:[%s2900_s5 + $0x8] sm:$0xff] (!%p1666_p12)  }
  0x4d   : > { %356 = vxpose.xlu0.b32.cont [2/4] (short) (!%p1666_p12), %v345_v1, 128  ;;  %712 = vmatpush1.bf16.msra.mxu1 (!%p1666_p12), %v351_v4  ;;  %v701_v15 = vld [vmem:[%s2898_s3] sm:$0x3] (!%p1666_p12) }
  0x4e   : > { %388 = vxpose.xlu1.b32.cont [2/4] (short) (!%p1666_p12), %v346_v3, 128  ;;  %713 = vmatprep.subr.bf16.mxu1 (!%p1666_p12), %v354_v10  ;;  %v702_v18 = vld [vmem:[%s2899_s4] sm:$0xf] (!%p1666_p12) }
  0x4f   : > { %1828 = vmatpush3.bf16.msra.mxu0 (!%p1666_p12), %v2026_v12  ;;  %v2555_v12 = vld [vmem:[%s2897_s2] ss:$0 sm:$0xff] (!%p1666_p12) }
  0x50   : > { %1829 = vmatprep.subr.bf16.mxu0 %v2028_v16 }
  0x51   : > { %357 = vxpose.xlu0.b32.cont [3/4] (short) %v347_v5, 128  ;;  %714 = vmatpush1.bf16.msra.mxu1 %v353_v11 }
  0x52   : > { %389 = vxpose.xlu1.b32.cont [3/4] (short) %v348_v7, 128  ;;  %1863 = vmatprep.subr.bf16.mxu1 %v2027_v13 }
  0x53   : > { %1830 = vmatpush3.bf16.msra.mxu0 %v2028_v16 }
  0x54   : > { %1686 = vmatmul.mubr.msk.bf16.vlgmr.msra.gmra.mrb[0].mxu1 %vm458_vm0, %v701_v15 }
  0x55   : > { %358 = vxpose.xlu0.b32.end [4/4] (short) %v349_v6, 128  ;;  %1864 = vmatpush3.bf16.msra.mxu1 %v2027_v13 }
  0x56   : > { %390 = vxpose.xlu1.b32.end [4/4] (short) %v350_v8, 128  ;;  %1865 = vmatprep.subr.bf16.mxu1 %v2029_v17 }
  0x59   : > { %1866 = vmatpush3.bf16.msra.mxu1 %v2029_v17 }
  0x7e   : > { %2025 = vset.pattern.permute.xlu0 %v2283_v14  ;;  %v2560_v14 = vld [vmem:[%s2901_s6] ss:$0 sm:$0xff] }
  0xae   : > { %705 = vperm.xlu0 %2025, %v702_v18  }
  0xc9   : > { %v371_v19 = vpop.trf.xlu0 }
  0xca   : > { %v403_v20 = vpop.trf.xlu1 }
  0xcd   : > { %v372_v21 = vpop.trf.xlu0 }
  0xce   : > { %v419_v22 = vpack.c.bf16 %v372_v21, %v371_v19  ;;  %v404_v23 = vpop.trf.xlu1 }
  0xcf   : > { %v427_v54 = vpack.c.bf16 %v404_v23, %v403_v20 }
  0xd0   : > { %1831 = vmatprep.mubr.msk.bf16.mxu0 %vm458_vm0, %v419_v22  ;;  %1867 = vmatprep.mubr.msk.bf16.mxu1 %vm458_vm0, %v419_v22 }
  0xd1   : > { %v373_v24 = vpop.trf.xlu0 }
  0xd2   : > { %v405_v26 = vpop.trf.xlu1 }
  0xd5   : > { %v374_v25 = vpop.trf.xlu0 }
  0xd6   : > { %v420_v27 = vpack.c.bf16 %v374_v25, %v373_v24  ;;  %v406_v29 = vpop.trf.xlu1 }
  0xd7   : > { %v428_v56 = vpack.c.bf16 %v406_v29, %v405_v26 }
  0xd8   : > { %1832 = vmatmul.mubr.msk.bf16.vlgmr.msra.gmra.mrb[0].mxu0 %vm458_vm0, %v420_v27  ;;  %1868 = vmatmul.mubr.msk.bf16.vlgmr.msra.gmra.mrb[4].mxu1 %vm458_vm0, %v420_v27 }
  0xd9   : > { %v375_v28 = vpop.trf.xlu0 }
  0xda   : > { %v407_v33 = vpop.trf.xlu1 }
  0xdd   : > { %v376_v30 = vpop.trf.xlu0 }
  0xde   : > { %v421_v31 = vpack.c.bf16 %v376_v30, %v375_v28  ;;  %v408_v36 = vpop.trf.xlu1 }
  0xdf   : > { %v429_v57 = vpack.c.bf16 %v408_v36, %v407_v33 }
  0xe0   : > { %1835 = vmatprep.mubr.msk.bf16.mxu0 %vm458_vm0, %v421_v31  ;;  %1871 = vmatprep.mubr.msk.bf16.mxu1 %vm458_vm0, %v421_v31 }
  0xe1   : > { %v377_v32 = vpop.trf.xlu0 }
  0xe2   : > { %v409_v39 = vpop.trf.xlu1 }
  0xe5   : > { %v378_v34 = vpop.trf.xlu0 }
  0xe6   : > { %v422_v35 = vpack.c.bf16 %v378_v34, %v377_v32  ;;  %v410_v42 = vpop.trf.xlu1 }
  0xe7   : > { %v430_v59 = vpack.c.bf16 %v410_v42, %v409_v39 }
  0xe8   : > { %1836 = vmatmul.mubr.msk.bf16.gmra.mrb[4].mxu0 %vm458_vm0, %v422_v35  ;;  %1872 = vmatmul.mubr.msk.bf16.gmra.mrb[8].mxu1 %vm458_vm0, %v422_v35 }
  0xe9   : > { %v379_v37 = vpop.trf.xlu0 }
  0xea   : > { %v411_v46 = vpop.trf.xlu1 }
  0xed   : > { %v380_v38 = vpop.trf.xlu0 }
  0xee   : > { %v423_v40 = vpack.c.bf16 %v380_v38, %v379_v37  ;;  %v412_v49 = vpop.trf.xlu1 }
  0xef   : > { %v431_v60 = vpack.c.bf16 %v412_v49, %v411_v46 }
  0xf0   : > { %1839 = vmatprep.mubr.msk.bf16.mxu0 %vm458_vm0, %v423_v40  ;;  %1875 = vmatprep.mubr.msk.bf16.mxu1 %vm458_vm0, %v423_v40 }
  0xf1   : > { %v381_v41 = vpop.trf.xlu0 }
  0xf2   : > { %v413_v52 = vpop.trf.xlu1 }
  0xf5   : > { %v382_v43 = vpop.trf.xlu0 }
  0xf6   : > { %v424_v44 = vpack.c.bf16 %v382_v43, %v381_v41  ;;  %v414_v55 = vpop.trf.xlu1 }
  0xf7   : > { %v432_v63 = vpack.c.bf16 %v414_v55, %v413_v52 }
  0xf8   : > { %1840 = vmatmul.mubr.msk.bf16.gmra.mrb[8].mxu0 %vm458_vm0, %v424_v44  ;;  %1876 = vmatmul.mubr.msk.bf16.gmra.mrb[12].mxu1 %vm458_vm0, %v424_v44 }
  0xf9   : > { %v383_v45 = vpop.trf.xlu0 }
  0xfa   : > { %v415_v58 = vpop.trf.xlu1 }
  0xfd   : > { %v384_v47 = vpop.trf.xlu0 }
  0xfe   : > { %v425_v48 = vpack.c.bf16 %v384_v47, %v383_v45  ;;  %v416_v61 = vpop.trf.xlu1 }
  0xff   : > { %v433_v0 = vpack.c.bf16 %v416_v61, %v415_v58 }
 0x100   : > { %1843 = vmatprep.mubr.msk.bf16.mxu0 %vm458_vm0, %v425_v48  ;;  %1879 = vmatprep.mubr.msk.bf16.mxu1 %vm458_vm0, %v425_v48 }
 0x101   : > { %v385_v50 = vpop.trf.xlu0 }
 0x102   : > { %v417_v62 = vpop.trf.xlu1 }
 0x105   : > { %v386_v51 = vpop.trf.xlu0 }
 0x106   : > { %v426_v53 = vpack.c.bf16 %v386_v51, %v385_v50  ;;  %v418_v1 = vpop.trf.xlu1 }
 0x107   : > { %v434_v2 = vpack.c.bf16 %v418_v1, %v417_v62 }
 0x108   : > { %1844 = vmatmul.mubr.msk.bf16.gmra.mrb[12].mxu0 %vm458_vm0, %v426_v53  ;;  %1880 = vmatmul.mubr.msk.bf16.gmra.mrb[16].mxu1 %vm458_vm0, %v426_v53 }
 0x109   : > { %1847 = vmatprep.mubr.msk.bf16.mxu0 %vm458_vm0, %v427_v54  ;;  %1883 = vmatprep.mubr.msk.bf16.mxu1 %vm458_vm0, %v427_v54 }
 0x110   : > { %1848 = vmatmul.mubr.msk.bf16.gmra.mrb[16].mxu0 %vm458_vm0, %v428_v56  ;;  %1884 = vmatmul.mubr.msk.bf16.gmra.mrb[20].mxu1 %vm458_vm0, %v428_v56 }
 0x111   : > { %1851 = vmatprep.mubr.msk.bf16.mxu0 %vm458_vm0, %v429_v57  ;;  %1887 = vmatprep.mubr.msk.bf16.mxu1 %vm458_vm0, %v429_v57 }
 0x118   : > { %1852 = vmatmul.mubr.msk.bf16.gmra.mrb[20].mxu0 %vm458_vm0, %v430_v59  ;;  %1888 = vmatmul.mubr.msk.bf16.gmra.mrb[24].mxu1 %vm458_vm0, %v430_v59 }
 0x119   : > { %1855 = vmatprep.mubr.msk.bf16.mxu0 %vm458_vm0, %v431_v60  ;;  %1891 = vmatprep.mubr.msk.bf16.mxu1 %vm458_vm0, %v431_v60 }
 0x120   : > { %1856 = vmatmul.mubr.msk.bf16.gmra.mrb[24].mxu0 %vm458_vm0, %v432_v63  ;;  %1892 = vmatmul.mubr.msk.bf16.gmra.mrb[28].mxu1 %vm458_vm0, %v432_v63 }
 0x121   : > { %1859 = vmatprep.mubr.msk.bf16.mxu0 %vm458_vm0, %v433_v0  ;;  %1895 = vmatprep.mubr.msk.bf16.mxu1 %vm458_vm0, %v433_v0 }
 0x127   : > { %v745_v3 = vpop.f32.mrb[0].mxu1 }
 0x128   : > { %1860 = vmatmul.mubr.msk.bf16.gmra.mrb[28].mxu0 %vm458_vm0, %v434_v2  ;;  %1896 = vmatmul.mubr.msk.bf16.gmra.mrb[32].mxu1 %vm458_vm0, %v434_v2  ;;  %v747_v4 = vpop.f32.mrb[1].mxu1 }
 0x129   : > { %v749_v5 = vpop.f32.mrb[2].mxu1 }
 0x12a   : > { %v750_v6 = vpop.f32.mrb[3].mxu1 }
 0x12d   : > { %v706_v7 = vpop.permute.xlu0 %705 }
 0x12e   : > { %v746_v8 = vadd.f32 %v745_v3, %v706_v7  ;;  %v748_v9 = vadd.f32 %v747_v4, %v706_v7 }
 0x130   : > { %v1687_v10 = vpack.c.bf16 %v748_v9, %v746_v8 }
 0x132   : > { %1688 = vst.sshfl [vmem:[#allocation3] sm:$0x33 pattern:$0x76325410] %v1687_v10 }
 0x1ab   : > { %v1833_v11 = vpop.f32.mrb[0].mxu0  ;;  %v1869_v13 = vpop.f32.mrb[4].mxu1 }
 0x1ac   : > { %v541_v15 = vpop.f32.mrb[1].mxu0  ;;  %v823_v16 = vpop.f32.mrb[5].mxu1  ;;  %v550_v19 = vadd.f32 %v1833_v11, %v2555_v12  ;;  %v832_v20 = vadd.f32 %v1869_v13, %v2560_v14 }
 0x1ad   : > { %v1834_v17 = vpop.f32.mrb[2].mxu0  ;;  %v1870_v18 = vpop.f32.mrb[6].mxu1  ;;  %v542_v25 = vadd.f32 %v2555_v12, %v541_v15  ;;  %v824_v26 = vadd.f32 %v2560_v14, %v823_v16 }
 0x1ae   : > { %v553_v21 = vadd.f32 %v1834_v17, %v2555_v12  ;;  %v835_v22 = vadd.f32 %v1870_v18, %v2560_v14  ;;  %v544_v23 = vpop.f32.mrb[3].mxu0  ;;  %v826_v24 = vpop.f32.mrb[7].mxu1 }
 0x1af   : > { %v545_v27 = vadd.f32 %v2555_v12, %v544_v23  ;;  %v827_v28 = vadd.f32 %v2560_v14, %v826_v24 }
 0x1b0   : > { %v669_v29 = vpack.c.bf16 %v553_v21, %v550_v19  ;;  %v951_v30 = vpack.c.bf16 %v835_v22, %v832_v20 }
 0x1b1   : > { %v668_v31 = vpack.c.bf16 %v545_v27, %v542_v25  ;;  %v950_v32 = vpack.c.bf16 %v827_v28, %v824_v26 }
 0x1b2   : > { %686 = vst.msk [vmem:[#allocation2 + $0x8] sm:$0xff] %vm684_vm1, %v669_v29 }
 0x1b3   : > { %967 = vst.msk [vmem:[#allocation4 + $0x8] sm:$0xff] %vm458_vm0, %v951_v30  ;;  %966 = vst.msk [vmem:[#allocation4] sm:$0xff] %vm458_vm0, %v950_v32 }
 0x1b4   : > { %685 = vst.msk [vmem:[#allocation2] sm:$0xff] %vm684_vm1, %v668_v31 }
 0x1bb   : > { %v1837_v33 = vpop.f32.mrb[4].mxu0  ;;  %v1873_v34 = vpop.f32.mrb[8].mxu1 }
 0x1bc   : > { %v557_v35 = vpop.f32.mrb[5].mxu0  ;;  %v839_v36 = vpop.f32.mrb[9].mxu1  ;;  %v566_v39 = vadd.f32 %v1837_v33, %v2555_v12  ;;  %v848_v40 = vadd.f32 %v1873_v34, %v2560_v14 }
 0x1bd   : > { %v1838_v37 = vpop.f32.mrb[6].mxu0  ;;  %v1874_v38 = vpop.f32.mrb[10].mxu1  ;;  %v558_v45 = vadd.f32 %v2555_v12, %v557_v35  ;;  %v840_v46 = vadd.f32 %v2560_v14, %v839_v36 }
 0x1be   : > { %v569_v41 = vadd.f32 %v1838_v37, %v2555_v12  ;;  %v851_v42 = vadd.f32 %v1874_v38, %v2560_v14  ;;  %v560_v43 = vpop.f32.mrb[7].mxu0  ;;  %v842_v44 = vpop.f32.mrb[11].mxu1 }
 0x1bf   : > { %v561_v47 = vadd.f32 %v2555_v12, %v560_v43  ;;  %v843_v48 = vadd.f32 %v2560_v14, %v842_v44 }
 0x1c0   : > { %v671_v49 = vpack.c.bf16 %v569_v41, %v566_v39  ;;  %v953_v50 = vpack.c.bf16 %v851_v42, %v848_v40 }
 0x1c1   : > { %v670_v51 = vpack.c.bf16 %v561_v47, %v558_v45  ;;  %v952_v52 = vpack.c.bf16 %v843_v48, %v840_v46 }
 0x1c2   : > { %688 = vst.msk [vmem:[#allocation2 + $0x18] sm:$0xff] %vm684_vm1, %v671_v49 }
 0x1c3   : > { %969 = vst.msk [vmem:[#allocation4 + $0x18] sm:$0xff] %vm458_vm0, %v953_v50  ;;  %968 = vst.msk [vmem:[#allocation4 + $0x10] sm:$0xff] %vm458_vm0, %v952_v52 }
 0x1c4   : > { %687 = vst.msk [vmem:[#allocation2 + $0x10] sm:$0xff] %vm684_vm1, %v670_v51 }
 0x1cb   : > { %v1841_v53 = vpop.f32.mrb[8].mxu0  ;;  %v1877_v54 = vpop.f32.mrb[12].mxu1 }
 0x1cc   : > { %v573_v55 = vpop.f32.mrb[9].mxu0  ;;  %v855_v56 = vpop.f32.mrb[13].mxu1  ;;  %v582_v59 = vadd.f32 %v1841_v53, %v2555_v12  ;;  %v864_v60 = vadd.f32 %v1877_v54, %v2560_v14 }
 0x1cd   : > { %v1842_v57 = vpop.f32.mrb[10].mxu0  ;;  %v1878_v58 = vpop.f32.mrb[14].mxu1  ;;  %v574_v1 = vadd.f32 %v2555_v12, %v573_v55  ;;  %v856_v2 = vadd.f32 %v2560_v14, %v855_v56 }
 0x1ce   : > { %v585_v61 = vadd.f32 %v1842_v57, %v2555_v12  ;;  %v867_v62 = vadd.f32 %v1878_v58, %v2560_v14  ;;  %v576_v63 = vpop.f32.mrb[11].mxu0  ;;  %v858_v0 = vpop.f32.mrb[15].mxu1 }
 0x1cf   : > { %v577_v3 = vadd.f32 %v2555_v12, %v576_v63  ;;  %v859_v4 = vadd.f32 %v2560_v14, %v858_v0 }
 0x1d0   : > { %v673_v5 = vpack.c.bf16 %v585_v61, %v582_v59  ;;  %v955_v6 = vpack.c.bf16 %v867_v62, %v864_v60 }
 0x1d1   : > { %v672_v7 = vpack.c.bf16 %v577_v3, %v574_v1  ;;  %v954_v8 = vpack.c.bf16 %v859_v4, %v856_v2 }
 0x1d2   : > { %690 = vst.msk [vmem:[#allocation2 + $0x28] sm:$0xff] %vm684_vm1, %v673_v5 }
 0x1d3   : > { %971 = vst.msk [vmem:[#allocation4 + $0x28] sm:$0xff] %vm458_vm0, %v955_v6  ;;  %970 = vst.msk [vmem:[#allocation4 + $0x20] sm:$0xff] %vm458_vm0, %v954_v8 }
 0x1d4   : > { %689 = vst.msk [vmem:[#allocation2 + $0x20] sm:$0xff] %vm684_vm1, %v672_v7 }
 0x1db   : > { %v1845_v9 = vpop.f32.mrb[12].mxu0  ;;  %v1881_v10 = vpop.f32.mrb[16].mxu1 }
 0x1dc   : > { %v589_v11 = vpop.f32.mrb[13].mxu0  ;;  %v871_v13 = vpop.f32.mrb[17].mxu1  ;;  %v598_v17 = vadd.f32 %v1845_v9, %v2555_v12  ;;  %v880_v18 = vadd.f32 %v1881_v10, %v2560_v14 }
 0x1dd   : > { %v1846_v15 = vpop.f32.mrb[14].mxu0  ;;  %v1882_v16 = vpop.f32.mrb[18].mxu1  ;;  %v590_v23 = vadd.f32 %v2555_v12, %v589_v11  ;;  %v872_v24 = vadd.f32 %v2560_v14, %v871_v13 }
 0x1de   : > { %v601_v19 = vadd.f32 %v1846_v15, %v2555_v12  ;;  %v883_v20 = vadd.f32 %v1882_v16, %v2560_v14  ;;  %v592_v21 = vpop.f32.mrb[15].mxu0  ;;  %v874_v22 = vpop.f32.mrb[19].mxu1 }
 0x1df   : > { %v593_v25 = vadd.f32 %v2555_v12, %v592_v21  ;;  %v875_v26 = vadd.f32 %v2560_v14, %v874_v22 }
 0x1e0   : > { %v675_v27 = vpack.c.bf16 %v601_v19, %v598_v17  ;;  %v957_v28 = vpack.c.bf16 %v883_v20, %v880_v18 }
 0x1e1   : > { %v674_v29 = vpack.c.bf16 %v593_v25, %v590_v23  ;;  %v956_v30 = vpack.c.bf16 %v875_v26, %v872_v24 }
 0x1e2   : > { %692 = vst.msk [vmem:[#allocation2 + $0x38] sm:$0xff] %vm684_vm1, %v675_v27 }
 0x1e3   : > { %973 = vst.msk [vmem:[#allocation4 + $0x38] sm:$0xff] %vm458_vm0, %v957_v28  ;;  %972 = vst.msk [vmem:[#allocation4 + $0x30] sm:$0xff] %vm458_vm0, %v956_v30  ;;  %v1849_v31 = vpop.f32.mrb[16].mxu0  ;;  %v1885_v32 = vpop.f32.mrb[20].mxu1 }
 0x1e4   : > { %691 = vst.msk [vmem:[#allocation2 + $0x30] sm:$0xff] %vm684_vm1, %v674_v29  ;;  %v605_v33 = vpop.f32.mrb[17].mxu0  ;;  %v887_v34 = vpop.f32.mrb[21].mxu1  ;;  %v614_v37 = vadd.f32 %v1849_v31, %v2555_v12  ;;  %v896_v38 = vadd.f32 %v1885_v32, %v2560_v14 }
 0x1e5   : > { %v1850_v35 = vpop.f32.mrb[18].mxu0  ;;  %v1886_v36 = vpop.f32.mrb[22].mxu1  ;;  %v606_v43 = vadd.f32 %v2555_v12, %v605_v33  ;;  %v888_v44 = vadd.f32 %v2560_v14, %v887_v34 }
 0x1e6   : > { %v617_v39 = vadd.f32 %v1850_v35, %v2555_v12  ;;  %v899_v40 = vadd.f32 %v1886_v36, %v2560_v14  ;;  %v608_v41 = vpop.f32.mrb[19].mxu0  ;;  %v890_v42 = vpop.f32.mrb[23].mxu1 }
 0x1e7   : > { %v609_v45 = vadd.f32 %v2555_v12, %v608_v41  ;;  %v891_v46 = vadd.f32 %v2560_v14, %v890_v42 }
 0x1e8   : > { %v677_v47 = vpack.c.bf16 %v617_v39, %v614_v37  ;;  %v959_v48 = vpack.c.bf16 %v899_v40, %v896_v38 }
 0x1e9   : > { %v676_v49 = vpack.c.bf16 %v609_v45, %v606_v43  ;;  %v958_v50 = vpack.c.bf16 %v891_v46, %v888_v44 }
 0x1ea   : > { %694 = vst.msk [vmem:[#allocation2 + $0x48] sm:$0xff] %vm684_vm1, %v677_v47 }
 0x1eb   : > { %975 = vst.msk [vmem:[#allocation4 + $0x48] sm:$0xff] %vm458_vm0, %v959_v48  ;;  %974 = vst.msk [vmem:[#allocation4 + $0x40] sm:$0xff] %vm458_vm0, %v958_v50  ;;  %v1853_v51 = vpop.f32.mrb[20].mxu0  ;;  %v1889_v52 = vpop.f32.mrb[24].mxu1 }
 0x1ec   : > { %693 = vst.msk [vmem:[#allocation2 + $0x40] sm:$0xff] %vm684_vm1, %v676_v49  ;;  %v621_v53 = vpop.f32.mrb[21].mxu0  ;;  %v903_v54 = vpop.f32.mrb[25].mxu1  ;;  %v630_v57 = vadd.f32 %v1853_v51, %v2555_v12  ;;  %v912_v58 = vadd.f32 %v1889_v52, %v2560_v14 }
 0x1ed   : > { %v1854_v55 = vpop.f32.mrb[22].mxu0  ;;  %v1890_v56 = vpop.f32.mrb[26].mxu1  ;;  %v622_v63 = vadd.f32 %v2555_v12, %v621_v53  ;;  %v904_v0 = vadd.f32 %v2560_v14, %v903_v54 }
 0x1ee   : > { %v633_v59 = vadd.f32 %v1854_v55, %v2555_v12  ;;  %v915_v60 = vadd.f32 %v1890_v56, %v2560_v14  ;;  %v624_v61 = vpop.f32.mrb[23].mxu0  ;;  %v906_v62 = vpop.f32.mrb[27].mxu1 }
 0x1ef   : > { %v625_v1 = vadd.f32 %v2555_v12, %v624_v61  ;;  %v907_v2 = vadd.f32 %v2560_v14, %v906_v62 }
 0x1f0   : > { %v679_v3 = vpack.c.bf16 %v633_v59, %v630_v57  ;;  %v961_v4 = vpack.c.bf16 %v915_v60, %v912_v58 }
 0x1f1   : > { %v678_v5 = vpack.c.bf16 %v625_v1, %v622_v63  ;;  %v960_v6 = vpack.c.bf16 %v907_v2, %v904_v0 }
 0x1f2   : > { %696 = vst.msk [vmem:[#allocation2 + $0x58] sm:$0xff] %vm684_vm1, %v679_v3 }
 0x1f3   : > { %977 = vst.msk [vmem:[#allocation4 + $0x58] sm:$0xff] %vm458_vm0, %v961_v4  ;;  %976 = vst.msk [vmem:[#allocation4 + $0x50] sm:$0xff] %vm458_vm0, %v960_v6  ;;  %v1857_v7 = vpop.f32.mrb[24].mxu0  ;;  %v1893_v8 = vpop.f32.mrb[28].mxu1 }
 0x1f4   : > { %695 = vst.msk [vmem:[#allocation2 + $0x50] sm:$0xff] %vm684_vm1, %v678_v5  ;;  %v637_v9 = vpop.f32.mrb[25].mxu0  ;;  %v919_v10 = vpop.f32.mrb[29].mxu1  ;;  %v646_v15 = vadd.f32 %v1857_v7, %v2555_v12  ;;  %v928_v16 = vadd.f32 %v1893_v8, %v2560_v14 }
 0x1f5   : > { %v1858_v11 = vpop.f32.mrb[26].mxu0  ;;  %v1894_v13 = vpop.f32.mrb[30].mxu1  ;;  %v638_v21 = vadd.f32 %v2555_v12, %v637_v9  ;;  %v920_v22 = vadd.f32 %v2560_v14, %v919_v10 }
 0x1f6   : > { %v649_v17 = vadd.f32 %v1858_v11, %v2555_v12  ;;  %v931_v18 = vadd.f32 %v1894_v13, %v2560_v14  ;;  %v640_v19 = vpop.f32.mrb[27].mxu0  ;;  %v922_v20 = vpop.f32.mrb[31].mxu1 }
 0x1f7   : > { %v641_v23 = vadd.f32 %v2555_v12, %v640_v19  ;;  %v923_v24 = vadd.f32 %v2560_v14, %v922_v20 }
 0x1f8   : > { %v681_v25 = vpack.c.bf16 %v649_v17, %v646_v15  ;;  %v963_v26 = vpack.c.bf16 %v931_v18, %v928_v16 }
 0x1f9   : > { %v680_v27 = vpack.c.bf16 %v641_v23, %v638_v21  ;;  %v962_v28 = vpack.c.bf16 %v923_v24, %v920_v22 }
 0x1fa   : > { %698 = vst.msk [vmem:[#allocation2 + $0x68] sm:$0xff] %vm684_vm1, %v681_v25 }
 0x1fb   : > { %979 = vst.msk [vmem:[#allocation4 + $0x68] sm:$0xff] %vm458_vm0, %v963_v26  ;;  %978 = vst.msk [vmem:[#allocation4 + $0x60] sm:$0xff] %vm458_vm0, %v962_v28  ;;  %v1861_v29 = vpop.f32.mrb[28].mxu0  ;;  %v1897_v30 = vpop.f32.mrb[32].mxu1 }
 0x1fc   : > { %697 = vst.msk [vmem:[#allocation2 + $0x60] sm:$0xff] %vm684_vm1, %v680_v27  ;;  %v653_v31 = vpop.f32.mrb[29].mxu0  ;;  %v935_v32 = vpop.f32.mrb[33].mxu1  ;;  %v662_v35 = vadd.f32 %v1861_v29, %v2555_v12  ;;  %v944_v36 = vadd.f32 %v1897_v30, %v2560_v14 }
 0x1fd   : > { %v1862_v33 = vpop.f32.mrb[30].mxu0  ;;  %v1898_v34 = vpop.f32.mrb[34].mxu1  ;;  %v654_v41 = vadd.f32 %v2555_v12, %v653_v31  ;;  %v936_v42 = vadd.f32 %v2560_v14, %v935_v32 }
 0x1fe   : > { %v665_v37 = vadd.f32 %v1862_v33, %v2555_v12  ;;  %v947_v38 = vadd.f32 %v1898_v34, %v2560_v14  ;;  %v656_v39 = vpop.f32.mrb[31].mxu0  ;;  %v938_v40 = vpop.f32.mrb[35].mxu1 }
 0x1ff   : > { %v657_v43 = vadd.f32 %v2555_v12, %v656_v39  ;;  %v939_v44 = vadd.f32 %v2560_v14, %v938_v40 }
 0x200   : > { %v683_v45 = vpack.c.bf16 %v665_v37, %v662_v35  ;;  %v965_v46 = vpack.c.bf16 %v947_v38, %v944_v36 }
 0x201   : > { %v682_v47 = vpack.c.bf16 %v657_v43, %v654_v41  ;;  %v964_v48 = vpack.c.bf16 %v939_v44, %v936_v42 }
 0x202   : > { %700 = vst.msk [vmem:[#allocation2 + $0x78] sm:$0xff] %vm684_vm1, %v683_v45 }
 0x203   : > { %981 = vst.msk [vmem:[#allocation4 + $0x78] sm:$0xff] %vm458_vm0, %v965_v46  ;;  %980 = vst.msk [vmem:[#allocation4 + $0x70] sm:$0xff] %vm458_vm0, %v964_v48 }
 0x204   : > { %699 = vst.msk [vmem:[#allocation2 + $0x70] sm:$0xff] %vm684_vm1, %v682_v47 }
 0x205 PF: > { %v1711_v49 = vld.sshfl [vmem:[#allocation3] sm:$0x33 pattern:$0x76325410]  ;;  %vm1038_vm2 = vcmask 1041408   ;;  %v2284_v14 = vmov 0  }
 0x206   : > { %v1012_v12 = vcombine.high %v1711_v49, %v1711_v49  ;;  %v1040_v50 = vsel %vm1038_vm2, %v1711_v49, 0  ;;  %1077 = vmatprep.mubr.bf16.mxu0 %v2284_v14  ;;  %s1708_s21 = sshll.u32 %s2262_s7, 7  ;;  %vm1013_vm3 = vcmask 31744   ;;  %v1374_v59 = vld [vmem:[#allocation4 + $0x40] sm:$0xff]  ;;  %v1375_v61 = vld [vmem:[#allocation4 + $0x48] sm:$0xff]  ;;  %v1376_v63 = vld [vmem:[#allocation4 + $0x50] sm:$0xff] }
 0x207   : > { %s991_s8 = sshra.s32 %s1708_s21, 4  ;;  %v1366_v60 = vld [vmem:[#allocation4] sm:$0xff]  ;;  %1899 = vmatprep.subr.bf16.mxu1 %v1374_v59  ;;  %v1367_v62 = vld [vmem:[#allocation4 + $0x8] sm:$0xff]  ;;  %v1368_v0 = vld [vmem:[#allocation4 + $0x10] sm:$0xff]  ;;  %s983_s25 = sshra.s32 %s1708_s21, 7 }
 0x208   : > { %1712 = vmatprep.subr.msk.bf16.mxu0 %vm1038_vm2, %v1012_v12  ;;  %s1710_s23 = sshll.u32 %s991_s8, 3  ;;  %1907 = vmatpush3.bf16.msra.mxu1 %v1366_v60  ;;  %v1377_v1 = vld [vmem:[#allocation4 + $0x58] sm:$0xff]  ;;  %v1378_v30 = vld [vmem:[#allocation4 + $0x60] sm:$0xff]  ;;  %v1379_v37 = vld [vmem:[#allocation4 + $0x68] sm:$0xff]  ;;  %s1709_s18 = sshll.u32 %s983_s25, 3 }
 0x209   : > { %1046 = vmatpush1.bf16.msra.mxu0 %v1040_v50  ;;  %s994_s22 = scalar_lea.vmem [#allocation2], %s1710_s23  ;;  %1900 = vmatprep.subr.bf16.mxu1 %v1375_v61  ;;  %v1369_v28 = vld [vmem:[#allocation4 + $0x18] sm:$0xff]  ;;  %v1370_v32 = vld [vmem:[#allocation4 + $0x20] sm:$0xff]  ;;  %v1371_v38 = vld [vmem:[#allocation4 + $0x28] sm:$0xff]  ;;  %s986_s20 = scalar_lea.vmem %s2481_s24, %s1709_s18 [#allocation5] }
 0x20a   : > { %1763 = vmatprep.subr.bf16.mxu0 %v1374_v59  ;;  %v1380_v40 = vld [vmem:[#allocation4 + $0x70] sm:$0xff]  ;;  %v1381_v47 = vld [vmem:[#allocation4 + $0x78] sm:$0xff]  ;;  %s1722_s19 = sshll.u32 %s2266_s11, 3  ;;  %s1566_s8 = sshll.u32 %s2490_s13, 4  ;;  %s2829_s8 = int_to_ptr.vmem [resolvable:$true] %s1566_s8 }
 0x20b   : > { %v995_v51 = vld [vmem:[%s994_s22] sm:$0xff]  ;;  %v996_v52 = vld [vmem:[%s994_s22 + $0x8] sm:$0xff]  ;;  %v997_v53 = vld [vmem:[%s994_s22 + $0x10] sm:$0xff]  ;;  %s1563_s15 = sadd.s32 %s2262_s7, %s1722_s19  ;;  %s2834_s7 = scalar_lea.sflag [#allocation7], %s335_s16 }
 0x20c   : > { %1713 = vmatmul.mubr.msk.bf16.vlgmr.msra.gmra.mrb[0].mxu0 %vm1013_vm3, %v995_v51  ;;  %v998_v54 = vld [vmem:[%s994_s22 + $0x18] sm:$0xff]  ;;  %v999_v55 = vld [vmem:[%s994_s22 + $0x20] sm:$0xff]  ;;  %v1000_v56 = vld [vmem:[%s994_s22 + $0x28] sm:$0xff]  ;;  %1908 = vmatpush3.bf16.msra.mxu1 %v1367_v62  ;;  %s1723_s21 = sshll.u32 %s1563_s15, 7  ;;  %s2156_s11 = scalar_lea.vmem %s2829_s8, 512 }
 0x20d   : > { %1087 = vmatprep.mubr.bf16.mxu0 %v2284_v14  ;;  %v1001_v57 = vld [vmem:[%s994_s22 + $0x30] sm:$0xff]  ;;  %v1002_v58 = vld [vmem:[%s994_s22 + $0x38] sm:$0xff]  ;;  %1764 = vmatpush3.bf16.msra.mxu0 %v1366_v60  ;;  %s2921_s22 = sld [smem:[#allocation15_spill]]  ;;  %p2157_p7 = scmp.ne.s32.totalorder %s2829_s8, %s2156_s11 }
 0x20e   : > { %1765 = vmatprep.subr.bf16.mxu0 %v1375_v61  ;;  %1901 = vmatprep.subr.bf16.mxu1 %v1376_v63  ;;  %v1372_v42 = vld [vmem:[#allocation4 + $0x30] sm:$0xff]  ;;  %v1373_v48 = vld [vmem:[#allocation4 + $0x38] sm:$0xff]  ;;  %p2922_p2 = scmp.ne.s32.totalorder %s2917_s26, 0  ;;  %s2285_s18 = smov [#allocation8]  }
 0x210   : > { %1909 = vmatpush3.bf16.msra.mxu1 %v1368_v0  ;;  %p2158_p4 = pnand %p2157_p7, %p2922_p2 }
 0x211   : > { %1766 = vmatpush3.bf16.msra.mxu0 %v1367_v62  ;;  %1902 = vmatprep.subr.bf16.mxu1 %v1377_v1 }
 0x212   : > { %1767 = vmatprep.subr.bf16.mxu0 %v1376_v63  ;;  %p2159_p0 = pneg %p2158_p4 }
 0x213   : > { %s2827_s25 = scalar_lea.hbm %s2921_s22, %s1723_s21 }
 0x214   : > { %1714 = vmatmul.mubr.msk.bf16.gmra.mrb[4].mxu0 %vm1013_vm3, %v996_v52  ;;  %1910 = vmatpush3.bf16.msra.mxu1 %v1369_v28 }
 0x215   : > { %1097 = vmatprep.mubr.bf16.mxu0 %v2284_v14  ;;  %1768 = vmatpush3.bf16.msra.mxu0 %v1368_v0 }
 0x216   : > { %1769 = vmatprep.subr.bf16.mxu0 %v1377_v1  ;;  %1903 = vmatprep.subr.bf16.mxu1 %v1378_v30 }
 0x218   : > { %1911 = vmatpush3.bf16.msra.mxu1 %v1370_v32 }
 0x219   : > { %1770 = vmatpush3.bf16.msra.mxu0 %v1369_v28  ;;  %1904 = vmatprep.subr.bf16.mxu1 %v1379_v37 }
 0x21a   : > { %1771 = vmatprep.subr.bf16.mxu0 %v1378_v30 }
 0x21c   : > { %1715 = vmatmul.mubr.msk.bf16.gmra.mrb[8].mxu0 %vm1013_vm3, %v997_v53  ;;  %1912 = vmatpush3.bf16.msra.mxu1 %v1371_v38 }
 0x21d   : > { %1107 = vmatprep.mubr.bf16.mxu0 %v2284_v14  ;;  %1772 = vmatpush3.bf16.msra.mxu0 %v1370_v32 }
 0x21e   : > { %1773 = vmatprep.subr.bf16.mxu0 %v1379_v37  ;;  %1905 = vmatprep.subr.bf16.mxu1 %v1380_v40 }
 0x220   : > { %1913 = vmatpush3.bf16.msra.mxu1 %v1372_v42 }
 0x221   : > { %1774 = vmatpush3.bf16.msra.mxu0 %v1371_v38  ;;  %1906 = vmatprep.subr.bf16.mxu1 %v1381_v47 }
 0x222   : > { %1775 = vmatprep.subr.bf16.mxu0 %v1380_v40 }
 0x224   : > { %1716 = vmatmul.mubr.msk.bf16.gmra.mrb[12].mxu0 %vm1013_vm3, %v998_v54  ;;  %1914 = vmatpush3.bf16.msra.mxu1 %v1373_v48 }
 0x225   : > { %1117 = vmatprep.mubr.bf16.mxu0 %v2284_v14  ;;  %1776 = vmatpush3.bf16.msra.mxu0 %v1372_v42 }
 0x226   : > { %1777 = vmatprep.subr.bf16.mxu0 %v1381_v47 }
 0x229   : > { %1778 = vmatpush3.bf16.msra.mxu0 %v1373_v48 }
 0x22c   : > { %1717 = vmatmul.mubr.msk.bf16.gmra.mrb[16].mxu0 %vm1013_vm3, %v999_v55 }
 0x22d   : > { %1127 = vmatprep.mubr.bf16.mxu0 %v2284_v14 }
 0x234   : > { %1718 = vmatmul.mubr.msk.bf16.gmra.mrb[20].mxu0 %vm1013_vm3, %v1000_v56 }
 0x235   : > { %1137 = vmatprep.mubr.bf16.mxu0 %v2284_v14 }
 0x23c   : > { %1719 = vmatmul.mubr.msk.bf16.gmra.mrb[24].mxu0 %vm1013_vm3, %v1001_v57 }
 0x23d   : > { %1147 = vmatprep.mubr.bf16.mxu0 %v2284_v14 }
 0x244   : > { %1720 = vmatmul.mubr.msk.bf16.gmra.mrb[28].mxu0 %vm1013_vm3, %v1002_v58 }
 0x2df   : > { %v2669_v2 = vpop.f32.mrb[0].mxu0 }
 0x2e0   : > { %v2671_v3 = vpop.f32.mrb[1].mxu0 }
 0x2e1   : > { %v2673_v4 = vpop.f32.mrb[2].mxu0  ;;  %v1158_v5 = vmax.f32 %v2669_v2, %v2671_v3 }
 0x2e2   : > { %v2677_v6 = vpop.f32.mrb[3].mxu0 }
 0x2e3   : > { %v1161_v7 = vmax.f32 %v2673_v4, %v2677_v6 }
 0x2e7   : > { %v2681_v8 = vpop.f32.mrb[4].mxu0 }
 0x2e8   : > { %v2683_v9 = vpop.f32.mrb[5].mxu0 }
 0x2e9   : > { %v2685_v10 = vpop.f32.mrb[6].mxu0  ;;  %v1164_v11 = vmax.f32 %v2681_v8, %v2683_v9 }
 0x2ea   : > { %v2689_v13 = vpop.f32.mrb[7].mxu0 }
 0x2eb   : > { %1165 = vmax.xlane.f32.xlu0 %v1164_v11  ;;  %v1167_v15 = vmax.f32 %v2685_v10, %v2689_v13 }
 0x2ef   : > { %1168 = vmax.xlane.f32.xlu0 %v1167_v15  ;;  %v2693_v16 = vpop.f32.mrb[8].mxu0 }
 0x2f0   : > { %v2695_v17 = vpop.f32.mrb[9].mxu0 }
 0x2f1   : > { %v2697_v18 = vpop.f32.mrb[10].mxu0  ;;  %v1170_v19 = vmax.f32 %v2693_v16, %v2695_v17 }
 0x2f2   : > { %v2701_v20 = vpop.f32.mrb[11].mxu0 }
 0x2f3   : > { %1171 = vmax.xlane.f32.xlu1 %v1170_v19  ;;  %v1173_v21 = vmax.f32 %v2697_v18, %v2701_v20 }
 0x2f7   : > { %1174 = vmax.xlane.f32.xlu1 %v1173_v21  ;;  %v2705_v22 = vpop.f32.mrb[12].mxu0 }
 0x2f8   : > { %v2707_v23 = vpop.f32.mrb[13].mxu0 }
 0x2f9   : > { %v2709_v24 = vpop.f32.mrb[14].mxu0  ;;  %v1176_v25 = vmax.f32 %v2705_v22, %v2707_v23 }
 0x2fa   : > { %v2713_v26 = vpop.f32.mrb[15].mxu0 }
 0x2fb   : > { %1177 = vmax.xlane.f32.xlu0 %v1176_v25  ;;  %v1179_v27 = vmax.f32 %v2709_v24, %v2713_v26 }
 0x2fd   : > { %1180 = vmax.xlane.f32.xlu1 %v1179_v27 }
 0x2ff   : > { %1159 = vmax.xlane.f32.xlu0 %v1158_v5  ;;  %v2717_v29 = vpop.f32.mrb[16].mxu0 }
 0x300   : > { %v2719_v31 = vpop.f32.mrb[17].mxu0 }
 0x301   : > { %1162 = vmax.xlane.f32.xlu1 %v1161_v7  ;;  %v2721_v33 = vpop.f32.mrb[18].mxu0  ;;  %v1182_v34 = vmax.f32 %v2717_v29, %v2719_v31 }
 0x302   : > { %v2725_v35 = vpop.f32.mrb[19].mxu0 }
 0x303   : > { %1183 = vmax.xlane.f32.xlu0 %v1182_v34  ;;  %v1185_v36 = vmax.f32 %v2721_v33, %v2725_v35 }
 0x305   : > { %1186 = vmax.xlane.f32.xlu1 %v1185_v36 }
 0x307   : > { %v2729_v39 = vpop.f32.mrb[20].mxu0 }
 0x308   : > { %v2731_v41 = vpop.f32.mrb[21].mxu0 }
 0x309   : > { %v2733_v43 = vpop.f32.mrb[22].mxu0  ;;  %v1188_v44 = vmax.f32 %v2729_v39, %v2731_v41 }
 0x30a   : > { %v2737_v45 = vpop.f32.mrb[23].mxu0 }
 0x30b   : > { %1189 = vmax.xlane.f32.xlu0 %v1188_v44  ;;  %v1191_v46 = vmax.f32 %v2733_v43, %v2737_v45 }
 0x30d   : > { %1192 = vmax.xlane.f32.xlu1 %v1191_v46 }
 0x30f   : > { %v2741_v49 = vpop.f32.mrb[24].mxu0 }
 0x310   : > { %v2743_v12 = vpop.f32.mrb[25].mxu0 }
 0x311   : > { %v2745_v50 = vpop.f32.mrb[26].mxu0  ;;  %v1194_v14 = vmax.f32 %v2741_v49, %v2743_v12 }
 0x312   : > { %v2749_v51 = vpop.f32.mrb[27].mxu0 }
 0x313   : > { %1195 = vmax.xlane.f32.xlu0 %v1194_v14  ;;  %v1197_v52 = vmax.f32 %v2745_v50, %v2749_v51 }
 0x315   : > { %1198 = vmax.xlane.f32.xlu1 %v1197_v52 }
 0x317   : > { %v2753_v53 = vpop.f32.mrb[28].mxu0 }
 0x318   : > { %v2755_v54 = vpop.f32.mrb[29].mxu0 }
 0x319   : > { %v2757_v55 = vpop.f32.mrb[30].mxu0  ;;  %v1200_v56 = vmax.f32 %v2753_v53, %v2755_v54 }
 0x31a   : > { %v2761_v57 = vpop.f32.mrb[31].mxu0 }
 0x31b   : > { %1201 = vmax.xlane.f32.xlu0 %v1200_v56  ;;  %v1203_v58 = vmax.f32 %v2757_v55, %v2761_v57 }
 0x31d   : > { %1204 = vmax.xlane.f32.xlu1 %v1203_v58 }
 0x378   : > { %v1166_v59 = vpop.xlane.xlu0 %1165 }
 0x379   : > { %v1210_v60 = vsub.f32 %v2681_v8, %v1166_v59  ;;  %v1211_v61 = vsub.f32 %v2683_v9, %v1166_v59 }
 0x37b   : > { %v1246_v62 = vmul.f32 1.442695, %v1210_v60  ;;  %v1248_v63 = vmul.f32 1.442695, %v1211_v61 }
 0x37c   : > { %v1169_v0 = vpop.xlane.xlu0 %1168 }
 0x37d   : > { %2030 = vpow2.f32 %v1246_v62  ;;  %v1212_v1 = vsub.f32 %v2685_v10, %v1169_v0  ;;  %v1213_v5 = vsub.f32 %v2689_v13, %v1169_v0 }
 0x37e   : > { %2032 = vpow2.f32 %v1248_v63 }
 0x37f   : > { %v1250_v7 = vmul.f32 1.442695, %v1212_v1  ;;  %v1252_v11 = vmul.f32 1.442695, %v1213_v5 }
 0x380   : > { %v1172_v15 = vpop.xlane.xlu1 %1171 }
 0x381   : > { %2034 = vpow2.f32 %v1250_v7  ;;  %v1214_v19 = vsub.f32 %v2693_v16, %v1172_v15  ;;  %v1215_v21 = vsub.f32 %v2695_v17, %v1172_v15 }
 0x382   : > { %2036 = vpow2.f32 %v1252_v11 }
 0x383   : > { %v1254_v8 = vmul.f32 1.442695, %v1214_v19  ;;  %v1256_v9 = vmul.f32 1.442695, %v1215_v21 }
 0x384   : > { %v1175_v25 = vpop.xlane.xlu1 %1174 }
 0x385   : > { %2038 = vpow2.f32 %v1254_v8  ;;  %v1216_v27 = vsub.f32 %v2697_v18, %v1175_v25  ;;  %v1217_v10 = vsub.f32 %v2701_v20, %v1175_v25 }
 0x386   : > { %2040 = vpow2.f32 %v1256_v9 }
 0x387   : > { %v2031_v13 = vpop.eup %2030  ;;  %v1258_v28 = vmul.f32 1.442695, %v1216_v27  ;;  %v1260_v30 = vmul.f32 1.442695, %v1217_v10 }
 0x388   : > { %v2033_v32 = vpop.eup %2032  ;;  %v1178_v34 = vpop.xlane.xlu0 %1177 }
 0x389   : > { %2042 = vpow2.f32 %v1258_v28  ;;  %v1218_v16 = vsub.f32 %v2705_v22, %v1178_v34  ;;  %v1219_v17 = vsub.f32 %v2707_v23, %v1178_v34  ;;  %v2775_v36 = vadd.f32 %v2033_v32, %v2031_v13 }
 0x38a   : > { %2044 = vpow2.f32 %v1260_v30  ;;  %v1181_v37 = vpop.xlane.xlu1 %1180 }
 0x38b   : > { %v2035_v38 = vpop.eup %2034  ;;  %v1262_v40 = vmul.f32 1.442695, %v1218_v16  ;;  %v1264_v18 = vmul.f32 1.442695, %v1219_v17  ;;  %v1220_v20 = vsub.f32 %v2709_v24, %v1181_v37  ;;  %v1221_v42 = vsub.f32 %v2713_v26, %v1181_v37 }
 0x38c   : > { %v2037_v44 = vpop.eup %2036  ;;  %v1160_v46 = vpop.xlane.xlu0 %1159  ;;  %v1352_v47 = vpack.c.bf16 %v2035_v38, %v2031_v13 }
 0x38d   : > { %2046 = vpow2.f32 %v1262_v40  ;;  %v1266_v48 = vmul.f32 1.442695, %v1220_v20  ;;  %v1268_v14 = vmul.f32 1.442695, %v1221_v42  ;;  %v1206_v22 = vsub.f32 %v2669_v2, %v1160_v46 }
 0x38e   : > { %2048 = vpow2.f32 %v1264_v18  ;;  %v1207_v23 = vsub.f32 %v2671_v3, %v1160_v46  ;;  %v1353_v52 = vpack.c.bf16 %v2037_v44, %v2033_v32  ;;  %v1163_v56 = vpop.xlane.xlu1 %1162  ;;  %v2781_v58 = vadd.f32 %v2037_v44, %v2035_v38 }
 0x38f   : > { %v2039_v59 = vpop.eup %2038  ;;  %2050 = vpow2.f32 %v1266_v48  ;;  %v1238_v24 = vmul.f32 1.442695, %v1206_v22  ;;  %v1208_v26 = vsub.f32 %v2673_v4, %v1163_v56  ;;  %v1209_v60 = vsub.f32 %v2677_v6, %v1163_v56 }
 0x390   : > { %v2041_v61 = vpop.eup %2040  ;;  %2052 = vpow2.f32 %v1268_v14  ;;  %v1240_v62 = vmul.f32 1.442695, %v1207_v23  ;;  %1422 = vmatprep.mubr.bf16.mxu1 %v1353_v52  ;;  %v1184_v63 = vpop.xlane.xlu0 %1183 }
 0x391   : > { %2054 = vpow2.f32 %v1238_v24  ;;  %v1242_v2 = vmul.f32 1.442695, %v1208_v26  ;;  %v1244_v0 = vmul.f32 1.442695, %v1209_v60  ;;  %1423 = vmatmul.mubr.bf16.vlgmr.msra.gmra.mrb[0].mxu1 %v1352_v47  ;;  %v1222_v3 = vsub.f32 %v2717_v29, %v1184_v63 }
 0x392   : > { %2056 = vpow2.f32 %v1240_v62  ;;  %v1223_v1 = vsub.f32 %v2719_v31, %v1184_v63  ;;  %v1187_v5 = vpop.xlane.xlu1 %1186  ;;  %v2787_v7 = vadd.f32 %v2041_v61, %v2039_v59 }
 0x393   : > { %v2043_v4 = vpop.eup %2042  ;;  %2058 = vpow2.f32 %v1242_v2  ;;  %v1270_v6 = vmul.f32 1.442695, %v1222_v3  ;;  %v1224_v11 = vsub.f32 %v2721_v33, %v1187_v5  ;;  %v1225_v15 = vsub.f32 %v2725_v35, %v1187_v5 }
 0x394   : > { %v2045_v19 = vpop.eup %2044  ;;  %2060 = vpow2.f32 %v1244_v0  ;;  %v1272_v21 = vmul.f32 1.442695, %v1223_v1  ;;  %v1354_v8 = vpack.c.bf16 %v2043_v4, %v2039_v59 }
 0x395   : > { %2062 = vpow2.f32 %v1270_v6  ;;  %v1274_v9 = vmul.f32 1.442695, %v1224_v11  ;;  %v1276_v29 = vmul.f32 1.442695, %v1225_v15  ;;  %v1355_v25 = vpack.c.bf16 %v2045_v19, %v2041_v61 }
 0x396   : > { %2064 = vpow2.f32 %v1272_v21  ;;  %v2791_v31 = vadd.f32 %v2045_v19, %v2043_v4 }
 0x397   : > { %v2047_v27 = vpop.eup %2046  ;;  %2066 = vpow2.f32 %v1274_v9  ;;  %1430 = vmatprep.mubr.bf16.mxu1 %v1355_v25 }
 0x398   : > { %v2049_v10 = vpop.eup %2048  ;;  %2068 = vpow2.f32 %v1276_v29  ;;  %v1190_v13 = vpop.xlane.xlu0 %1189 }
 0x399   : > { %v2051_v33 = vpop.eup %2050  ;;  %1431 = vmatmul.mubr.bf16.gmra.mrb[4].mxu1 %v1354_v8  ;;  %v1226_v35 = vsub.f32 %v2729_v39, %v1190_v13  ;;  %v1227_v28 = vsub.f32 %v2731_v41, %v1190_v13  ;;  %v2795_v30 = vadd.f32 %v2049_v10, %v2047_v27 }
 0x39a   : > { %v2053_v32 = vpop.eup %2052  ;;  %v1193_v34 = vpop.xlane.xlu1 %1192  ;;  %v1356_v16 = vpack.c.bf16 %v2051_v33, %v2047_v27 }
 0x39b   : > { %v2055_v17 = vpop.eup %2054  ;;  %v1278_v37 = vmul.f32 1.442695, %v1226_v35  ;;  %v1280_v38 = vmul.f32 1.442695, %v1227_v28  ;;  %v1228_v40 = vsub.f32 %v2733_v43, %v1193_v34  ;;  %v1229_v18 = vsub.f32 %v2737_v45, %v1193_v34 }
 0x39c   : > { %v2057_v20 = vpop.eup %2056  ;;  %v1357_v42 = vpack.c.bf16 %v2053_v32, %v2049_v10  ;;  %v2799_v44 = vadd.f32 %v2053_v32, %v2051_v33 }
 0x39d   : > { %v2059_v46 = vpop.eup %2058  ;;  %2070 = vpow2.f32 %v1278_v37  ;;  %v1282_v39 = vmul.f32 1.442695, %v1228_v40  ;;  %v1284_v41 = vmul.f32 1.442695, %v1229_v18  ;;  %v1302_v47 = vadd.f32 %v2057_v20, %v2055_v17 }
 0x39e   : > { %v2061_v48 = vpop.eup %2060  ;;  %2072 = vpow2.f32 %v1280_v38  ;;  %1438 = vmatprep.mubr.bf16.mxu1 %v1357_v42  ;;  %v1350_v14 = vpack.c.bf16 %v2059_v46, %v2055_v17 }
 0x39f   : > { %v2063_v22 = vpop.eup %2062  ;;  %2074 = vpow2.f32 %v1282_v39  ;;  %1303 = vadd.xlane.f32.xlu0 %v1302_v47  ;;  %v1351_v23 = vpack.c.bf16 %v2061_v48, %v2057_v20  ;;  %v1305_v43 = vadd.f32 %v2061_v48, %v2059_v46 }
 0x3a0   : > { %v2065_v52 = vpop.eup %2064  ;;  %2076 = vpow2.f32 %v1284_v41  ;;  %v1196_v45 = vpop.xlane.xlu0 %1195 }
 0x3a1   : > { %v2067_v56 = vpop.eup %2066  ;;  %1439 = vmatmul.mubr.bf16.gmra.mrb[8].mxu1 %v1356_v16  ;;  %1414 = vmatprep.mubr.bf16.mxu0 %v1351_v23  ;;  %v1230_v59 = vsub.f32 %v2741_v49, %v1196_v45  ;;  %v1231_v24 = vsub.f32 %v2743_v12, %v1196_v45  ;;  %v1326_v26 = vadd.f32 %v2065_v52, %v2063_v22 }
 0x3a2   : > { %v2069_v60 = vpop.eup %2068  ;;  %1306 = vadd.xlane.f32.xlu1 %v1305_v43  ;;  %1415 = vmatmul.mubr.bf16.vlgmr.msra.gmra.mrb[32].mxu0 %v1350_v14  ;;  %v1199_v61 = vpop.xlane.xlu1 %1198  ;;  %v1358_v62 = vpack.c.bf16 %v2067_v56, %v2063_v22 }
 0x3a3   : > { %v1286_v63 = vmul.f32 1.442695, %v1230_v59  ;;  %v1288_v2 = vmul.f32 1.442695, %v1231_v24  ;;  %v1232_v0 = vsub.f32 %v2745_v50, %v1199_v61  ;;  %v1233_v3 = vsub.f32 %v2749_v51, %v1199_v61  ;;  %1309 = vadd.xlane.f32.xlu0 %v2775_v36 }
 0x3a4   : > { %v1359_v1 = vpack.c.bf16 %v2069_v60, %v2065_v52  ;;  %v1329_v5 = vadd.f32 %v2069_v60, %v2067_v56 }
 0x3a5   : > { %2078 = vpow2.f32 %v1286_v63  ;;  %v1290_v49 = vmul.f32 1.442695, %v1232_v0  ;;  %v1292_v4 = vmul.f32 1.442695, %v1233_v3 }
 0x3a6   : > { %2080 = vpow2.f32 %v1288_v2  ;;  %1446 = vmatprep.mubr.bf16.mxu1 %v1359_v1  ;;  %1312 = vadd.xlane.f32.xlu1 %v2781_v58 }
 0x3a7   : > { %v2071_v12 = vpop.eup %2070  ;;  %2082 = vpow2.f32 %v1290_v49  ;;  %1315 = vadd.xlane.f32.xlu0 %v2787_v7 }
 0x3a8   : > { %v2073_v6 = vpop.eup %2072  ;;  %2084 = vpow2.f32 %v1292_v4  ;;  %v1202_v50 = vpop.xlane.xlu0 %1201 }
 0x3a9   : > { %v2075_v11 = vpop.eup %2074  ;;  %1447 = vmatmul.mubr.bf16.gmra.mrb[12].mxu1 %v1358_v62  ;;  %v1234_v51 = vsub.f32 %v2753_v53, %v1202_v50  ;;  %v1235_v36 = vsub.f32 %v2755_v54, %v1202_v50  ;;  %v1332_v15 = vadd.f32 %v2073_v6, %v2071_v12 }
 0x3aa   : > { %v2077_v19 = vpop.eup %2076  ;;  %1318 = vadd.xlane.f32.xlu1 %v2791_v31  ;;  %v1205_v21 = vpop.xlane.xlu1 %1204  ;;  %v1360_v8 = vpack.c.bf16 %v2075_v11, %v2071_v12 }
 0x3ab   : > { %v1294_v58 = vmul.f32 1.442695, %v1234_v51  ;;  %v1296_v9 = vmul.f32 1.442695, %v1235_v36  ;;  %1321 = vadd.xlane.f32.xlu0 %v2795_v30  ;;  %v1236_v7 = vsub.f32 %v2757_v55, %v1205_v21  ;;  %v1237_v29 = vsub.f32 %v2761_v57, %v1205_v21 }
 0x3ac   : > { %v1361_v25 = vpack.c.bf16 %v2077_v19, %v2073_v6  ;;  %v1335_v27 = vadd.f32 %v2077_v19, %v2075_v11 }
 0x3ad   : > { %2086 = vpow2.f32 %v1294_v58  ;;  %v1298_v53 = vmul.f32 1.442695, %v1236_v7  ;;  %v1300_v10 = vmul.f32 1.442695, %v1237_v29 }
 0x3ae   : > { %2088 = vpow2.f32 %v1296_v9  ;;  %1454 = vmatprep.mubr.bf16.mxu1 %v1361_v25  ;;  %1324 = vadd.xlane.f32.xlu1 %v2799_v44 }
 0x3af   : > { %v2079_v54 = vpop.eup %2078  ;;  %2090 = vpow2.f32 %v1298_v53  ;;  %1327 = vadd.xlane.f32.xlu0 %v1326_v26 }
 0x3b0   : > { %v2081_v31 = vpop.eup %2080  ;;  %2092 = vpow2.f32 %v1300_v10 }
 0x3b1   : > { %v2083_v13 = vpop.eup %2082  ;;  %1455 = vmatmul.mubr.bf16.gmra.mrb[16].mxu1 %v1360_v8  ;;  %v1338_v33 = vadd.f32 %v2081_v31, %v2079_v54 }
 0x3b2   : > { %v2085_v55 = vpop.eup %2084  ;;  %1330 = vadd.xlane.f32.xlu1 %v1329_v5  ;;  %v1362_v57 = vpack.c.bf16 %v2083_v13, %v2079_v54 }
 0x3b3   : > { %1333 = vadd.xlane.f32.xlu0 %v1332_v15  ;;  %v1363_v35 = vpack.c.bf16 %v2085_v55, %v2081_v31  ;;  %v1341_v28 = vadd.f32 %v2085_v55, %v2083_v13 }
 0x3b5   : > { %1462 = vmatprep.mubr.bf16.mxu1 %v1363_v35 }
 0x3b6   : > { %1336 = vadd.xlane.f32.xlu1 %v1335_v27 }
 0x3b7   : > { %v2087_v30 = vpop.eup %2086  ;;  %1339 = vadd.xlane.f32.xlu0 %v1338_v33 }
 0x3b8   : > { %v2089_v32 = vpop.eup %2088 }
 0x3b9   : > { %v2091_v34 = vpop.eup %2090  ;;  %1463 = vmatmul.mubr.bf16.gmra.mrb[20].mxu1 %v1362_v57  ;;  %v1344_v16 = vadd.f32 %v2089_v32, %v2087_v30 }
 0x3ba   : > { %v2093_v17 = vpop.eup %2092  ;;  %1342 = vadd.xlane.f32.xlu1 %v1341_v28  ;;  %v1364_v37 = vpack.c.bf16 %v2091_v34, %v2087_v30 }
 0x3bb   : > { %1345 = vadd.xlane.f32.xlu0 %v1344_v16  ;;  %v1365_v38 = vpack.c.bf16 %v2093_v17, %v2089_v32  ;;  %v1347_v40 = vadd.f32 %v2093_v17, %v2091_v34 }
 0x3bd   : > { %1470 = vmatprep.mubr.bf16.mxu1 %v1365_v38 }
 0x3be   : > { %1348 = vadd.xlane.f32.xlu1 %v1347_v40 }
 0x3c1   : > { %1471 = vmatmul.mubr.bf16.gmra.mrb[24].mxu1 %v1364_v37 }
 0x42c   : > { %v1304_v41 = vpop.xlane.xlu0 %1303 }
 0x42d   : > { %2094 = vrcp.f32 %v1304_v41 }
 0x42f   : > { %v1307_v14 = vpop.xlane.xlu1 %1306 }
 0x430   : > { %2096 = vrcp.f32 %v1307_v14  ;;  %v1310_v45 = vpop.xlane.xlu0 %1309 }
 0x431   : > { %2098 = vrcp.f32 %v1310_v45 }
 0x433   : > { %v1313_v56 = vpop.xlane.xlu1 %1312 }
 0x434   : > { %2100 = vrcp.f32 %v1313_v56  ;;  %v1316_v12 = vpop.xlane.xlu0 %1315 }
 0x435   : > { %2102 = vrcp.f32 %v1316_v12 }
 0x437   : > { %v2095_v3 = vpop.eup %2094  ;;  %v1319_v19 = vpop.xlane.xlu1 %1318 }
 0x438   : > { %2104 = vrcp.f32 %v1319_v19  ;;  %v1322_v7 = vpop.xlane.xlu0 %1321 }
 0x439   : > { %2106 = vrcp.f32 %v1322_v7 }
 0x43a   : > { %v2097_v6 = vpop.eup %2096 }
 0x43b   : > { %v2099_v8 = vpop.eup %2098  ;;  %v1325_v31 = vpop.xlane.xlu1 %1324 }
 0x43c   : > { %2108 = vrcp.f32 %v1325_v31  ;;  %v1328_v35 = vpop.xlane.xlu0 %1327 }
 0x43d   : > { %2110 = vrcp.f32 %v1328_v35 }
 0x43e   : > { %v2101_v29 = vpop.eup %2100 }
 0x43f   : > { %v2103_v33 = vpop.eup %2102  ;;  %v1331_v37 = vpop.xlane.xlu1 %1330 }
 0x440   : > { %2112 = vrcp.f32 %v1331_v37 }
 0x442   : > { %v2105_v28 = vpop.eup %2104 }
 0x443   : > { %v2107_v40 = vpop.eup %2106  ;;  %v1337_v14 = vpop.xlane.xlu1 %1336 }
 0x464   : > { %v1785_v18 = vpop.f32.mrb[0].mxu1 }
 0x465   : > { %v1786_v20 = vpop.f32.mrb[1].mxu1 }
 0x466   : > { %v1787_v42 = vadd.f32 %v1786_v20, %v1785_v18  ;;  %v1788_v44 = vpop.f32.mrb[2].mxu1 }
 0x467   : > { %v1789_v46 = vpop.f32.mrb[3].mxu1 }
 0x468   : > { %v1790_v39 = vadd.f32 %v1789_v46, %v1788_v44  ;;  %v1497_v9 = vmul.f32 %v2099_v8, %v1787_v42  ;;  %v1334_v42 = vpop.xlane.xlu0 %1333  ;;  %v2109_v44 = vpop.eup %2108 }
 0x469   : > { %2114 = vrcp.f32 %v1334_v42 }
 0x46a   : > { %v1498_v27 = vmul.f32 %v2101_v29, %v1790_v39  ;;  %2116 = vrcp.f32 %v1337_v14 }
 0x46c   : > { %v1791_v47 = vpop.f32.mrb[4].mxu1  ;;  %v1340_v45 = vpop.xlane.xlu0 %1339 }
 0x46d   : > { %v1792_v48 = vpop.f32.mrb[5].mxu1  ;;  %2118 = vrcp.f32 %v1340_v45 }
 0x46e   : > { %v1793_v22 = vadd.f32 %v1792_v48, %v1791_v47  ;;  %v1794_v23 = vpop.f32.mrb[6].mxu1 }
 0x46f   : > { %v1795_v43 = vpop.f32.mrb[7].mxu1 }
 0x470   : > { %v1796_v52 = vadd.f32 %v1795_v43, %v1794_v23  ;;  %v1499_v57 = vmul.f32 %v2103_v33, %v1793_v22  ;;  %v2111_v23 = vpop.eup %2110 }
 0x471   : > { %v2113_v56 = vpop.eup %2112 }
 0x472   : > { %v1500_v32 = vmul.f32 %v2105_v28, %v1796_v52 }
 0x474   : > { %v1797_v59 = vpop.f32.mrb[8].mxu1 }
 0x475   : > { %v1798_v24 = vpop.f32.mrb[9].mxu1  ;;  %v1779_v26 = vpop.f32.mrb[32].mxu0 }
 0x476   : > { %v1799_v60 = vadd.f32 %v1798_v24, %v1797_v59  ;;  %v1800_v61 = vpop.f32.mrb[10].mxu1  ;;  %v1780_v62 = vpop.f32.mrb[33].mxu0 }
 0x477   : > { %v1781_v63 = vadd.f32 %v1780_v62, %v1779_v26  ;;  %v1801_v2 = vpop.f32.mrb[11].mxu1  ;;  %v1782_v0 = vpop.f32.mrb[34].mxu0 }
 0x478   : > { %v1802_v1 = vadd.f32 %v1801_v2, %v1800_v61  ;;  %v1783_v5 = vpop.f32.mrb[35].mxu0  ;;  %v1501_v20 = vmul.f32 %v2107_v40, %v1799_v60  ;;  %v1343_v24 = vpop.xlane.xlu1 %1342 }
 0x479   : > { %v1784_v49 = vadd.f32 %v1783_v5, %v1782_v0  ;;  %v1495_v4 = vmul.f32 %v2095_v3, %v1781_v63  ;;  %v2115_v26 = vpop.eup %2114  ;;  %2120 = vrcp.f32 %v1343_v24  ;;  %v1346_v61 = vpop.xlane.xlu0 %1345 }
 0x47a   : > { %v1502_v39 = vmul.f32 %v2109_v44, %v1802_v1  ;;  %v2117_v62 = vpop.eup %2116  ;;  %2122 = vrcp.f32 %v1346_v61 }
 0x47b   : > { %1511 = vxpose.xlu0.b32.start [1/16] (narrow) %v1495_v4, 32  ;;  %v1496_v11 = vmul.f32 %v2097_v6, %v1784_v49  ;;  %v2119_v0 = vpop.eup %2118 }
 0x47c   : > { %v1803_v50 = vpop.f32.mrb[12].mxu1  ;;  %v1349_v2 = vpop.xlane.xlu1 %1348 }
 0x47d   : > { %v1804_v51 = vpop.f32.mrb[13].mxu1  ;;  %2124 = vrcp.f32 %v1349_v2 }
 0x47e   : > { %v1805_v36 = vadd.f32 %v1804_v51, %v1803_v50  ;;  %v1806_v15 = vpop.f32.mrb[14].mxu1  ;;  %v987_v50 = vld [vmem:[%s986_s20] sm:$0xff] }
 0x47f   : > { %v1807_v21 = vpop.f32.mrb[15].mxu1  ;;  %1512 = vxpose.xlu0.b32.cont [2/16] (narrow) %v1496_v11, 32 }
 0x480   : > { %v1808_v58 = vadd.f32 %v1807_v21, %v1806_v15  ;;  %v1503_v52 = vmul.f32 %v2111_v23, %v1805_v36  ;;  %v988_v36 = vld [vmem:[%s986_s20 + $0x10] sm:$0xff]  ;;  %v989_v21 = vld [vmem:[%s986_s20 + $0x20] sm:$0xff] }
 0x482   : > { %v1504_v59 = vmul.f32 %v2113_v56, %v1808_v58 }
 0x483   : > { %1513 = vxpose.xlu0.b32.cont [3/16] (narrow) %v1497_v9, 32  ;;  %v2121_v1 = vpop.eup %2120  ;;  %v990_v9 = vld [vmem:[%s986_s20 + $0x30] sm:$0xff]  ;;  %s2160_s20 = sshll.u32 %s2285_s18, 4  ;;  %s2161_s20 = int_to_ptr.vmem [resolvable:$false] %s2160_s20 }
 0x484   : > { %v1809_v25 = vpop.f32.mrb[16].mxu1  ;;  %v2123_v49 = vpop.eup %2122  ;;  %s2162_s19 = scalar_lea.vmem %s2161_s20, 1024  ;;  %p2163_p1 = scmp.lt.s32.totalorder %s2829_s8, %s2161_s20 }
 0x485   : > { %v1810_v53 = vpop.f32.mrb[17].mxu1  ;;  %p2164_p6 = scmp.lt.s32.totalorder %s2162_s19, %s2156_s11 }
 0x486   : > { %v1811_v10 = vadd.f32 %v1810_v53, %v1809_v25  ;;  %v1812_v54 = vpop.f32.mrb[18].mxu1 }
 0x487   : > { %v1813_v13 = vpop.f32.mrb[19].mxu1  ;;  %1514 = vxpose.xlu0.b32.cont [4/16] (narrow) %v1498_v27, 32  ;;  %v2125_v12 = vpop.eup %2124  ;;  %p2165_p9 = por %p2164_p6, %p2163_p1 }
 0x488   : > { %v1814_v55 = vadd.f32 %v1813_v13, %v1812_v54  ;;  %v1505_v60 = vmul.f32 %v2115_v26, %v1811_v10 }
 0x489   : > { %p2166_p3 = pnand %p2165_p9, %p2159_p0 }
 0x48a   : > { %v1506_v63 = vmul.f32 %v2117_v62, %v1814_v55 }
 0x48b   : > { %1515 = vxpose.xlu0.b32.cont [5/16] (narrow) %v1499_v57, 32 }
 0x48c   : > { %v1815_v30 = vpop.f32.mrb[20].mxu1 }
 0x48d   : > { %v1816_v34 = vpop.f32.mrb[21].mxu1 }
 0x48e   : > { %v1817_v16 = vadd.f32 %v1816_v34, %v1815_v30  ;;  %v1818_v17 = vpop.f32.mrb[22].mxu1 }
 0x48f   : > { %v1819_v38 = vpop.f32.mrb[23].mxu1  ;;  %1516 = vxpose.xlu0.b32.cont [6/16] (narrow) %v1500_v32, 32 }
 0x490   : > { %v1820_v18 = vadd.f32 %v1819_v38, %v1818_v17  ;;  %v1507_v3 = vmul.f32 %v2119_v0, %v1817_v16 }
 0x492   : > { %v1508_v5 = vmul.f32 %v2121_v1, %v1820_v18 }
 0x493   : > { %1517 = vxpose.xlu0.b32.cont [7/16] (narrow) %v1501_v20, 32 }
 0x494   : > { %v1821_v46 = vpop.f32.mrb[24].mxu1 }
 0x495   : > { %v1822_v41 = vpop.f32.mrb[25].mxu1 }
 0x496   : > { %v1823_v47 = vadd.f32 %v1822_v41, %v1821_v46  ;;  %v1824_v48 = vpop.f32.mrb[26].mxu1 }
 0x497   : > { %v1825_v22 = vpop.f32.mrb[27].mxu1  ;;  %1518 = vxpose.xlu0.b32.cont [8/16] (narrow) %v1502_v39, 32 }
 0x498   : > { %v1826_v43 = vadd.f32 %v1825_v22, %v1824_v48  ;;  %v1509_v4 = vmul.f32 %v2123_v49, %v1823_v47 }
 0x49a   : > { %v1510_v6 = vmul.f32 %v2125_v12, %v1826_v43 }
 0x49b   : > { %1519 = vxpose.xlu0.b32.cont [9/16] (narrow) %v1503_v52, 32 }
 0x49f   : > { %1520 = vxpose.xlu0.b32.cont [10/16] (narrow) %v1504_v59, 32 }
 0x4a3   : > { %1521 = vxpose.xlu0.b32.cont [11/16] (narrow) %v1505_v60, 32 }
 0x4a7   : > { %1522 = vxpose.xlu0.b32.cont [12/16] (narrow) %v1506_v63, 32 }
 0x4ab   : > { %1523 = vxpose.xlu0.b32.cont [13/16] (narrow) %v1507_v3, 32 }
 0x4af   : > { %1524 = vxpose.xlu0.b32.cont [14/16] (narrow) %v1508_v5, 32 }
 0x4b3   : > { %1525 = vxpose.xlu0.b32.cont [15/16] (narrow) %v1509_v4, 32 }
 0x4b7   : > { %1526 = vxpose.xlu0.b32.end [16/16] (narrow) %v1510_v6, 32 }
 0x4fb   : > { %v1527_v11 = vpop.trf.xlu0 }
 0x4fc   : > { %v1543_v51 = vadd.f32 %v1527_v11, %v987_v50 }
 0x4fe   : > { %1547 = vst [vmem:[%s2490_s13] sm:$0xff] %v1543_v51 }
 0x4ff   : > { %v1528_v15 = vpop.trf.xlu0 }
 0x500   : > { %v1544_v19 = vadd.f32 %v1528_v15, %v988_v36 }
 0x502   : > { %1548 = vst [vmem:[%s2490_s13 + $0x8] sm:$0xff] %v1544_v19 }
 0x503   : > { %v1529_v8 = vpop.trf.xlu0 }
 0x504   : > { %v1545_v58 = vadd.f32 %v1529_v8, %v989_v21 }
 0x506   : > { %1549 = vst [vmem:[%s2490_s13 + $0x10] sm:$0xff] %v1545_v58 }
 0x507   : > { %v1530_v7 = vpop.trf.xlu0 }
 0x508   : > { %v1546_v29 = vadd.f32 %v1530_v7, %v990_v9 }
 0x50a   : > { %1550 = vst [vmem:[%s2490_s13 + $0x18] sm:$0xff] %v1546_v29 }
 0x50b   : > { %2169 = shalt.err (!%p2166_p3)
}
 0x50c   : > { %s2170_s16 = scalar_lea.hbm %s2827_s25, 512  ;;  %s2174_s21 = scalar_lea.hbm %s2921_s22, 2048 }
 0x50d   : > { %p2171_p11 = scmp.ne.s32.totalorder %s2827_s25, %s2170_s16  ;;  %p2175_p8 = scmp.lt.u32.totalorder %s2827_s25, %s2921_s22 }
 0x50e   : > { %p2176_p10 = scmp.lt.u32.totalorder %s2174_s21, %s2170_s16  ;;  %p2178_p7 = scmp.lt.u32.totalorder %s2170_s16, %s2827_s25 }
 0x50f   : > { %p2172_p13 = pnand %p2171_p11, %p2922_p2 }
 0x510   : > { %p2177_p12 = por %p2176_p10, %p2175_p8 }
 0x511   : > { %p2173_p5 = pneg %p2172_p13 }
 0x512   : > { %p2179_p4 = por %p2178_p7, %p2177_p12 }
 0x514   : > { %p2180_p0 = pnand %p2179_p4, %p2173_p5 }
 0x516   : > { %2183 = shalt.err (!%p2180_p0)
}
 0x517   : > { %s2286_s11 = smov 128   ;;  %s2287_s18 = smov 256  }
 0x518   : > { %s2288_s20 = smov 8  }
 0x519   : > { %1917 = dma.vmem_to_hbm [thread:$0]  (%p2922_p2), %s2829_s8, 512, %s2827_s25, %s2834_s7, %s2286_s11, %s2287_s18, %s2288_s20  }
 0x51a PF: > { %p1928_p1 = scmp.ge.s32.totalorder %s2278_s14, 2  ;;  %s1581_s19 = sand.u32 1, %s2238_s27  }
 0x51b   : > { %p2923_p6 = scmp.ne.s32.totalorder %s2918_s12, 0  ;;  %s1582_s16 = scalar_lea.sflag [#allocation7], %s1581_s19 }
 0x51d   : > { %p1924_p9 = pnand %p1928_p1, %p2923_p6 }
 0x51f   : > { %2233 = dma.done.wait (!%p1924_p9), %s1582_s16, 512  }
 0x520   : > { %2235 = vsyncadd (!%p1924_p9), %s1582_s16, 4294966784  ;;  %s24_s14 = sadd.s32 1, %s2278_s14   ;;  %s2924_s26 = smov %s2421_s30 }
 0x521   : > { %p21_p3 = scmp.ge.s32.totalorder %s24_s14, 6   ;;  %s2925_s7 = sld [smem:[#allocation11_spill]] }
 0x522   : > { %s2926_s11 = sld [smem:[#allocation12_spill]]  ;;  %s2927_s12 = sld [smem:[#allocation13_spill]] }
 0x523   : > { %s2928_s13 = sld [smem:[#allocation14_spill]]  ;;  %s2929_s27 = smov %s2242_s28 }
 0x524   : > { %s2930_s28 = smov %s2246_s29  ;;  %s2931_s29 = smov %s2424_s17 }
 0x525   : > { %s2932_s30 = smov %s2254_s9  ;;  %s2933_s9 = smov %s2258_s10 }
 0x526   : > { %s2934_s10 = smov %s2924_s26  ;;  %23 = sbr.rel (!%p21_p3) target bundleno = 11 (0xb), region = 103 }
 0x52d   :  { %1587 = vsyncpa [#allocation6], 1 }
 0x52e   :  { %1589 = vsyncpa [#allocation6 + $0x1], 1 }
 0x52f   :  { %1590 = vsyncpa [#allocation7], 1 }
 0x530   :  { %1592 = vsyncpa [#allocation7 + $0x1], 1 }

</bundles_post_ra>
